<compile_context>
chip_gen: v6e
topology: v6e:2x2x1
jax: 0.10.0
libtpu: 0.0.40
codegen_flags: <defaults>
</compile_context>

<pallas_src>
import functools

import jax
import jax.numpy as jnp
from jax.experimental import pallas as pl
from jax.experimental.pallas import tpu as pltpu


def _tokenizer_kernel(Tp, C, S, wk_ref, bk_ref, wkv_ref, bkv_ref, xs_ref,
                      wat_ref, ba_ref, out_ref):
    # wk_ref : SMEM (K, D)      conv weight, tap-major (wk[k, d] = W[d, 0, 0, k])
    # bk_ref : SMEM (D,)        conv bias
    # wkv_ref: VMEM (1, K, Dt)  conv weight D-tile (for the MXU mean-combination)
    # bkv_ref: VMEM (1, 1, Dt)  conv bias D-tile (row vector)
    # xs_ref : VMEM (Bt, S*C, Lp)  stride-phase de-interleaved x; row s*C + c holds
    #                              x[b, c, j*S + s]
    # wat_ref: VMEM (C, C)      attention Linear weight (PyTorch (out, in) layout)
    # ba_ref : VMEM (C, 1)      attention Linear bias (channel on sublanes)
    # out_ref: VMEM (Bt, Dt*C, Tp_pad)  row d_local*C + c == output channel d0+d_local
    Bt = xs_ref.shape[0]
    K, D = wk_ref.shape
    Tp_pad = out_ref.shape[-1]
    Dt = out_ref.shape[1] // C
    inv_tp = 1.0 / float(Tp)

    d0 = pl.program_id(1) * Dt            # first global output channel of this D tile

    # Hoisted SMEM scalar reads: K*Dt + Dt sld per grid step, not per batch item.
    wk = [[wk_ref[k, d0 + d] for d in range(Dt)] for k in range(K)]
    bk = [bk_ref[d0 + d] for d in range(Dt)]

    wat = wat_ref[...].astype(jnp.float32)               # (C, C)
    ba = ba_ref[...].astype(jnp.float32)                 # (C, 1)
    wk_tile = wkv_ref[0].astype(jnp.float32)             # (K, Dt)
    bk_row = bkv_ref[0].astype(jnp.float32)              # (1, Dt)

    # ---- Phase 1: channel means via tap-mean algebra; attention batched over Bt*Dt.
    #   mean_t(conv)[c, d] = sum_k mean_t(tap_k)[c] * wk[k, d] + bias[d]
    # Tap means use exactly the true T' lanes, so no validity mask is needed anywhere.
    m_list = []
    for b in range(Bt):
        cols = []
        for k in range(K):
            tap = xs_ref[b, pl.ds((k % S) * C, C), pl.ds(k // S, Tp)].astype(jnp.float32)
            cols.append(jnp.sum(tap, axis=-1, keepdims=True) * inv_tp)       # (C, 1)
        tap_means = jnp.concatenate(cols, axis=1)                            # (C, K)
        m_list.append(jnp.dot(tap_means, wk_tile,
                              preferred_element_type=jnp.float32) + bk_row)  # (C, Dt)
    m_all = m_list[0] if Bt == 1 else jnp.concatenate(m_list, axis=1)        # (C, Bt*Dt)

    z = jnp.dot(wat, m_all, preferred_element_type=jnp.float32) + ba         # (C, Bt*Dt)
    z = z - jnp.max(z, axis=0, keepdims=True)
    e = jnp.exp(z)
    attn = e * pl.reciprocal(jnp.sum(e, axis=0, keepdims=True), approx=True)  # (C, Bt*Dt)

    # ---- Phase 2: conv (scalar-splat FMA on lane-dense taps) + scale + store.
    # Output channels are grouped so each store writes a full 8-sublane slab (unmasked
    # vst); taps are cheap VMEM re-loads so nothing stays live across iterations.
    gsz = 8 // C if (C < 8 and 8 % C == 0 and Dt % max(1, 8 // C) == 0) else 1
    for b in range(Bt):
        for g in range(Dt // gsz):
            rows = []
            for j in range(gsz):
                d = g * gsz + j
                acc = None
                for k in range(K):
                    tap = xs_ref[b, pl.ds((k % S) * C, C),
                                 pl.ds(k // S, Tp_pad)].astype(jnp.float32)
                    t = tap * wk[k][d]
                    acc = t if acc is None else acc + t
                col = b * Dt + d
                rows.append((acc + bk[d]) * attn[:, col:col + 1])
            tile = rows[0] if gsz == 1 else jnp.concatenate(rows, axis=0)
            out_ref[b, pl.ds(g * gsz * C, gsz * C), :] = tile.astype(out_ref.dtype)


def _pick_batch_tile(B, per_batch_bytes, target_bytes, max_tile=16):
    # Largest divisor of B (capped to keep the unrolled trace small) whose block fits
    # the VMEM budget.  No ">= 2 grid blocks" constraint: on 1-TC chips it only halves
    # the tile; on v7x the D grid axis (below) feeds the second TensorCore instead.
    best = 1
    for bt in range(1, min(B, max_tile) + 1):
        if B % bt == 0 and bt * per_batch_bytes <= target_bytes:
            best = bt
    return best


def tokenizer_forward(x, conv_w, conv_b, attn_w, attn_b, *, kernel_size, stride,
                      batch_tile=None):
    """x: (B, C, T); conv_w: (D, 1, 1, K); conv_b: (D,); attn_w: (C, C); attn_b: (C,).
    Returns (B, D, C, T')."""
    B, C, T = x.shape
    D = conv_w.shape[0]
    K, S = int(kernel_size), int(stride)
    Tp = (T - K) // S + 1
    if Tp < 1:
        raise ValueError("conv kernel does not fit in the time axis")

    # Lane-dense output width.  Pad-to-128 (+ post-kernel slice) only pays for small T';
    # for larger T' write the exact width (only the last partial vst is masked) and skip
    # the extra HBM read+write of the slice.
    if Tp % 128 == 0 or Tp >= 256:
        Tp_pad = Tp
    else:
        Tp_pad = ((Tp + 127) // 128) * 128
    Lp = max(Tp_pad + (K - 1) // S, (T + S - 1) // S)     # per-phase padded length

    # Stride-phase de-interleave (single reshape/transpose, no K-fold im2col), then
    # flatten (S, C) onto one sublane axis so VMEM blocks and loads are full-sublane.
    #   xs[b, s*C + c, j] = x[b, c, j*S + s]  (zero padded past T)
    x_pad = jnp.pad(x, ((0, 0), (0, 0), (0, Lp * S - T)))
    xs = x_pad.reshape(B, C, Lp, S).transpose(0, 3, 1, 2).reshape(B, S * C, Lp)

    wk = jnp.transpose(conv_w.reshape(D, K), (1, 0))      # (K, D), tap-major  (SMEM)
    bk = conv_b.reshape(D)                                # (D,)               (SMEM)
    wat = attn_w                                          # (C, C)
    ba = attn_b.reshape(C, 1)                             # (C, 1)

    # Batch tile sized from the chip's actual VMEM capacity: multi-MiB blocks amortize
    # the ~0.35us/grid-step overhead; BlockSpec double-buffers input + output blocks.
    vmem_cap = 64 * 1024 * 1024
    try:
        vmem_cap = int(pltpu.get_tpu_info().vmem_capacity_bytes)
    except Exception:
        pass  # conservative default (v7x per-core capacity)
    target_bytes = max(vmem_cap // 8, 2 * 1024 * 1024)
    itemsize = jnp.dtype(x.dtype).itemsize
    per_batch_bytes = itemsize * (S * C * Lp + D * C * Tp_pad)
    Bt = batch_tile if batch_tile is not None else _pick_batch_tile(
        B, per_batch_bytes, target_bytes)
    assert B % Bt == 0, (B, Bt)
    nb = B // Bt

    # If the batch axis alone can't feed two TensorCores (v7x megacore), split D into a
    # second 'parallel' grid axis — softmax couples only across C, never across D.
    nd = 1
    if nb < 2 and D % 2 == 0 and ((D // 2) * C) % 8 == 0:
        nd = 2
    Dt = D // nd

    wkv = wk.reshape(K, nd, Dt).transpose(1, 0, 2)        # (nd, K, Dt)  (VMEM, MXU means)
    bkv = conv_b.reshape(nd, 1, Dt)                       # (nd, 1, Dt)

    kernel = functools.partial(_tokenizer_kernel, Tp, C, S)
    out = pl.pallas_call(
        kernel,
        out_shape=jax.ShapeDtypeStruct((B, D * C, Tp_pad), x.dtype),
        grid=(nb, nd),
        in_specs=[
            pl.BlockSpec(memory_space=pltpu.MemorySpace.SMEM),        # conv weight (K, D)
            pl.BlockSpec(memory_space=pltpu.MemorySpace.SMEM),        # conv bias (D,)
            pl.BlockSpec((1, K, Dt), lambda i, j: (j, 0, 0)),         # conv weight D-tile
            pl.BlockSpec((1, 1, Dt), lambda i, j: (j, 0, 0)),         # conv bias D-tile
            pl.BlockSpec((Bt, S * C, Lp), lambda i, j: (i, 0, 0)),    # de-interleaved x
            pl.BlockSpec((C, C), lambda i, j: (0, 0)),                # attn weight
            pl.BlockSpec((C, 1), lambda i, j: (0, 0)),                # attn bias
        ],
        out_specs=pl.BlockSpec((Bt, Dt * C, Tp_pad), lambda i, j: (i, j, 0)),
        compiler_params=pltpu.CompilerParams(
            dimension_semantics=("parallel", "parallel"),
            vmem_limit_bytes=min(int(0.75 * vmem_cap), 96 * 1024 * 1024),
        ),
    )(wk, bk, wkv, bkv, xs, wat, ba)

    out = out.reshape(B, D, C, Tp_pad)                    # free row-major view
    if Tp_pad != Tp:
        out = out[..., :Tp]                               # only taken for small T'
    return out


def tokenizer_reference(x, conv_w, conv_b, attn_w, attn_b, *, kernel_size, stride):
    """Pure-JAX reference mirroring the PyTorch module (for out_dim > 1)."""
    x4 = x[:, None, :, :]                                 # (B, 1, C, T) NCHW
    y = jax.lax.conv_general_dilated(
        x4, conv_w, window_strides=(1, stride), padding="VALID",
        dimension_numbers=("NCHW", "OIHW", "NCHW"),
    ) + conv_b[None, :, None, None]                       # (B, D, C, T')
    m = jnp.mean(y, axis=-1)                              # (B, D, C)
    z = jnp.einsum("bdc,ec->bde", m, attn_w) + attn_b
    w = jax.nn.softmax(z, axis=-1)
    return y * w[..., None]


if __name__ == "__main__":
    # Small, module-consistent shapes.
    B, in_channels, T = 2, 4, 16
    kernel_size, stride, out_dim = 5, 2, 8

    key = jax.random.PRNGKey(0)
    k1, k2, k3, k4, k5 = jax.random.split(key, 5)
    conv_w = 0.1 * jax.random.normal(k1, (out_dim, 1, 1, kernel_size), jnp.float32)
    conv_b = 0.1 * jax.random.normal(k2, (out_dim,), jnp.float32)
    attn_w = 0.1 * jax.random.normal(k3, (in_channels, in_channels), jnp.float32)
    attn_b = 0.1 * jax.random.normal(k4, (in_channels,), jnp.float32)
    x = jax.random.normal(k5, (B, in_channels, T), jnp.float32)

    out = tokenizer_forward(x, conv_w, conv_b, attn_w, attn_b,
                            kernel_size=kernel_size, stride=stride)
    out = jax.block_until_ready(out)

    ref = tokenizer_reference(x, conv_w, conv_b, attn_w, attn_b,
                              kernel_size=kernel_size, stride=stride)
    assert out.shape == ref.shape, (out.shape, ref.shape)
    # Tolerance absorbs the EUP approximate reciprocal in the softmax denominator
    # (pl.reciprocal(approx=True), ~2^-12 relative); everything else is exact f32.
    max_err = float(jnp.max(jnp.abs(out - ref)))
    assert jnp.allclose(out, ref, rtol=1e-2, atol=1e-3), max_err

    print("KERNEL_OK")
</pallas_src>

<mosaic_0001>
module attributes {stable_mosaic.version = 11 : i64} {
  func.func @_tokenizer_kernel(%arg0: i32, %arg1: i32, %arg2: memref<5x8xf32, #tpu.memory_space<smem>>, %arg3: memref<8xf32, #tpu.memory_space<smem>>, %arg4: memref<1x5x4xf32, #tpu.memory_space<vmem>>, %arg5: memref<1x1x4xf32, #tpu.memory_space<vmem>>, %arg6: memref<2x8x130xf32, #tpu.memory_space<vmem>>, %arg7: memref<4x4xf32, #tpu.memory_space<vmem>>, %arg8: memref<4x1xf32, #tpu.memory_space<vmem>>, %arg9: memref<2x16x128xf32, #tpu.memory_space<vmem>>) attributes {dimension_semantics = [#tpu.dimension_semantics<parallel>, #tpu.dimension_semantics<parallel>], iteration_bounds = array<i64: 1, 2>, scalar_prefetch = 0 : i64, scratch_operands = 0 : i64, tpu.core_type = #tpu.core_type<tc>, window_params = [{transform_indices = @transform_0, window_bounds = array<i64: 5, 8>}, {transform_indices = @transform_1, window_bounds = array<i64: 8>}, {transform_indices = @transform_2, window_bounds = array<i64: 1, 5, 4>}, {transform_indices = @transform_3, window_bounds = array<i64: 1, 1, 4>}, {transform_indices = @transform_4, window_bounds = array<i64: 2, 8, 130>}, {pipeline_mode = #tpu.pipeline_mode<synchronous>, transform_indices = @transform_5, window_bounds = array<i64: 4, 4>}, {pipeline_mode = #tpu.pipeline_mode<synchronous>, transform_indices = @transform_6, window_bounds = array<i64: 4, 1>}, {transform_indices = @transform_7, window_bounds = array<i64: 2, 16, 128>}]} {
    %c4_i32 = arith.constant 4 : i32
    %0 = arith.muli %arg1, %c4_i32 : i32
    %c0_i32 = arith.constant 0 : i32
    %1 = arith.addi %0, %c0_i32 : i32
    %c0 = arith.constant 0 : index
    %2 = arith.index_cast %1 : i32 to index
    %3 = memref.load %arg2[%c0, %2] : memref<5x8xf32, #tpu.memory_space<smem>>
    %c1_i32 = arith.constant 1 : i32
    %4 = arith.addi %0, %c1_i32 : i32
    %c0_0 = arith.constant 0 : index
    %5 = arith.index_cast %4 : i32 to index
    %6 = memref.load %arg2[%c0_0, %5] : memref<5x8xf32, #tpu.memory_space<smem>>
    %c2_i32 = arith.constant 2 : i32
    %7 = arith.addi %0, %c2_i32 : i32
    %c0_1 = arith.constant 0 : index
    %8 = arith.index_cast %7 : i32 to index
    %9 = memref.load %arg2[%c0_1, %8] : memref<5x8xf32, #tpu.memory_space<smem>>
    %c3_i32 = arith.constant 3 : i32
    %10 = arith.addi %0, %c3_i32 : i32
    %c0_2 = arith.constant 0 : index
    %11 = arith.index_cast %10 : i32 to index
    %12 = memref.load %arg2[%c0_2, %11] : memref<5x8xf32, #tpu.memory_space<smem>>
    %c0_i32_3 = arith.constant 0 : i32
    %13 = arith.addi %0, %c0_i32_3 : i32
    %c1 = arith.constant 1 : index
    %14 = arith.index_cast %13 : i32 to index
    %15 = memref.load %arg2[%c1, %14] : memref<5x8xf32, #tpu.memory_space<smem>>
    %c1_i32_4 = arith.constant 1 : i32
    %16 = arith.addi %0, %c1_i32_4 : i32
    %c1_5 = arith.constant 1 : index
    %17 = arith.index_cast %16 : i32 to index
    %18 = memref.load %arg2[%c1_5, %17] : memref<5x8xf32, #tpu.memory_space<smem>>
    %c2_i32_6 = arith.constant 2 : i32
    %19 = arith.addi %0, %c2_i32_6 : i32
    %c1_7 = arith.constant 1 : index
    %20 = arith.index_cast %19 : i32 to index
    %21 = memref.load %arg2[%c1_7, %20] : memref<5x8xf32, #tpu.memory_space<smem>>
    %c3_i32_8 = arith.constant 3 : i32
    %22 = arith.addi %0, %c3_i32_8 : i32
    %c1_9 = arith.constant 1 : index
    %23 = arith.index_cast %22 : i32 to index
    %24 = memref.load %arg2[%c1_9, %23] : memref<5x8xf32, #tpu.memory_space<smem>>
    %c0_i32_10 = arith.constant 0 : i32
    %25 = arith.addi %0, %c0_i32_10 : i32
    %c2 = arith.constant 2 : index
    %26 = arith.index_cast %25 : i32 to index
    %27 = memref.load %arg2[%c2, %26] : memref<5x8xf32, #tpu.memory_space<smem>>
    %c1_i32_11 = arith.constant 1 : i32
    %28 = arith.addi %0, %c1_i32_11 : i32
    %c2_12 = arith.constant 2 : index
    %29 = arith.index_cast %28 : i32 to index
    %30 = memref.load %arg2[%c2_12, %29] : memref<5x8xf32, #tpu.memory_space<smem>>
    %c2_i32_13 = arith.constant 2 : i32
    %31 = arith.addi %0, %c2_i32_13 : i32
    %c2_14 = arith.constant 2 : index
    %32 = arith.index_cast %31 : i32 to index
    %33 = memref.load %arg2[%c2_14, %32] : memref<5x8xf32, #tpu.memory_space<smem>>
    %c3_i32_15 = arith.constant 3 : i32
    %34 = arith.addi %0, %c3_i32_15 : i32
    %c2_16 = arith.constant 2 : index
    %35 = arith.index_cast %34 : i32 to index
    %36 = memref.load %arg2[%c2_16, %35] : memref<5x8xf32, #tpu.memory_space<smem>>
    %c0_i32_17 = arith.constant 0 : i32
    %37 = arith.addi %0, %c0_i32_17 : i32
    %c3 = arith.constant 3 : index
    %38 = arith.index_cast %37 : i32 to index
    %39 = memref.load %arg2[%c3, %38] : memref<5x8xf32, #tpu.memory_space<smem>>
    %c1_i32_18 = arith.constant 1 : i32
    %40 = arith.addi %0, %c1_i32_18 : i32
    %c3_19 = arith.constant 3 : index
    %41 = arith.index_cast %40 : i32 to index
    %42 = memref.load %arg2[%c3_19, %41] : memref<5x8xf32, #tpu.memory_space<smem>>
    %c2_i32_20 = arith.constant 2 : i32
    %43 = arith.addi %0, %c2_i32_20 : i32
    %c3_21 = arith.constant 3 : index
    %44 = arith.index_cast %43 : i32 to index
    %45 = memref.load %arg2[%c3_21, %44] : memref<5x8xf32, #tpu.memory_space<smem>>
    %c3_i32_22 = arith.constant 3 : i32
    %46 = arith.addi %0, %c3_i32_22 : i32
    %c3_23 = arith.constant 3 : index
    %47 = arith.index_cast %46 : i32 to index
    %48 = memref.load %arg2[%c3_23, %47] : memref<5x8xf32, #tpu.memory_space<smem>>
    %c0_i32_24 = arith.constant 0 : i32
    %49 = arith.addi %0, %c0_i32_24 : i32
    %c4 = arith.constant 4 : index
    %50 = arith.index_cast %49 : i32 to index
    %51 = memref.load %arg2[%c4, %50] : memref<5x8xf32, #tpu.memory_space<smem>>
    %c1_i32_25 = arith.constant 1 : i32
    %52 = arith.addi %0, %c1_i32_25 : i32
    %c4_26 = arith.constant 4 : index
    %53 = arith.index_cast %52 : i32 to index
    %54 = memref.load %arg2[%c4_26, %53] : memref<5x8xf32, #tpu.memory_space<smem>>
    %c2_i32_27 = arith.constant 2 : i32
    %55 = arith.addi %0, %c2_i32_27 : i32
    %c4_28 = arith.constant 4 : index
    %56 = arith.index_cast %55 : i32 to index
    %57 = memref.load %arg2[%c4_28, %56] : memref<5x8xf32, #tpu.memory_space<smem>>
    %c3_i32_29 = arith.constant 3 : i32
    %58 = arith.addi %0, %c3_i32_29 : i32
    %c4_30 = arith.constant 4 : index
    %59 = arith.index_cast %58 : i32 to index
    %60 = memref.load %arg2[%c4_30, %59] : memref<5x8xf32, #tpu.memory_space<smem>>
    %c0_i32_31 = arith.constant 0 : i32
    %61 = arith.addi %0, %c0_i32_31 : i32
    %62 = arith.index_cast %61 : i32 to index
    %63 = memref.load %arg3[%62] : memref<8xf32, #tpu.memory_space<smem>>
    %c1_i32_32 = arith.constant 1 : i32
    %64 = arith.addi %0, %c1_i32_32 : i32
    %65 = arith.index_cast %64 : i32 to index
    %66 = memref.load %arg3[%65] : memref<8xf32, #tpu.memory_space<smem>>
    %c2_i32_33 = arith.constant 2 : i32
    %67 = arith.addi %0, %c2_i32_33 : i32
    %68 = arith.index_cast %67 : i32 to index
    %69 = memref.load %arg3[%68] : memref<8xf32, #tpu.memory_space<smem>>
    %c3_i32_34 = arith.constant 3 : i32
    %70 = arith.addi %0, %c3_i32_34 : i32
    %71 = arith.index_cast %70 : i32 to index
    %72 = memref.load %arg3[%71] : memref<8xf32, #tpu.memory_space<smem>>
    %c0_35 = arith.constant 0 : index
    %c0_36 = arith.constant 0 : index
    %73 = vector.load %arg7[%c0_35, %c0_36] : memref<4x4xf32, #tpu.memory_space<vmem>>, vector<4x4xf32>
    %c0_37 = arith.constant 0 : index
    %c0_38 = arith.constant 0 : index
    %74 = vector.load %arg8[%c0_37, %c0_38] : memref<4x1xf32, #tpu.memory_space<vmem>>, vector<4x1xf32>
    %c0_39 = arith.constant 0 : index
    %c0_40 = arith.constant 0 : index
    %c0_41 = arith.constant 0 : index
    %75 = vector.load %arg4[%c0_39, %c0_40, %c0_41] : memref<1x5x4xf32, #tpu.memory_space<vmem>>, vector<1x5x4xf32>
    %76 = vector.shape_cast %75 : vector<1x5x4xf32> to vector<5x4xf32>
    %c0_42 = arith.constant 0 : index
    %c0_43 = arith.constant 0 : index
    %c0_44 = arith.constant 0 : index
    %77 = vector.load %arg5[%c0_42, %c0_43, %c0_44] : memref<1x1x4xf32, #tpu.memory_space<vmem>>, vector<1x1x4xf32>
    %78 = vector.shape_cast %77 : vector<1x1x4xf32> to vector<1x4xf32>
    %c0_45 = arith.constant 0 : index
    %c0_46 = arith.constant 0 : index
    %c0_47 = arith.constant 0 : index
    %79 = vector.load %arg6[%c0_45, %c0_46, %c0_47] : memref<2x8x130xf32, #tpu.memory_space<vmem>>, vector<1x4x6xf32>
    %80 = vector.shape_cast %79 : vector<1x4x6xf32> to vector<4x6xf32>
    %cst = arith.constant dense<0.000000e+00> : vector<4xf32>
    %81 = vector.multi_reduction <add>, %80, %cst [1] : vector<4x6xf32> to vector<4xf32>
    %82 = vector.shape_cast %81 : vector<4xf32> to vector<4x1xf32>
    %cst_48 = arith.constant 0.166666672 : f32
    %83 = vector.broadcast %cst_48 : f32 to vector<4x1xf32>
    %84 = arith.mulf %82, %83 : vector<4x1xf32>
    %c0_49 = arith.constant 0 : index
    %c4_50 = arith.constant 4 : index
    %c0_51 = arith.constant 0 : index
    %85 = vector.load %arg6[%c0_49, %c4_50, %c0_51] : memref<2x8x130xf32, #tpu.memory_space<vmem>>, vector<1x4x6xf32>
    %86 = vector.shape_cast %85 : vector<1x4x6xf32> to vector<4x6xf32>
    %cst_52 = arith.constant dense<0.000000e+00> : vector<4xf32>
    %87 = vector.multi_reduction <add>, %86, %cst_52 [1] : vector<4x6xf32> to vector<4xf32>
    %88 = vector.shape_cast %87 : vector<4xf32> to vector<4x1xf32>
    %cst_53 = arith.constant 0.166666672 : f32
    %89 = vector.broadcast %cst_53 : f32 to vector<4x1xf32>
    %90 = arith.mulf %88, %89 : vector<4x1xf32>
    %c0_54 = arith.constant 0 : index
    %c0_55 = arith.constant 0 : index
    %c1_56 = arith.constant 1 : index
    %91 = vector.load %arg6[%c0_54, %c0_55, %c1_56] : memref<2x8x130xf32, #tpu.memory_space<vmem>>, vector<1x4x6xf32>
    %92 = vector.shape_cast %91 : vector<1x4x6xf32> to vector<4x6xf32>
    %cst_57 = arith.constant dense<0.000000e+00> : vector<4xf32>
    %93 = vector.multi_reduction <add>, %92, %cst_57 [1] : vector<4x6xf32> to vector<4xf32>
    %94 = vector.shape_cast %93 : vector<4xf32> to vector<4x1xf32>
    %cst_58 = arith.constant 0.166666672 : f32
    %95 = vector.broadcast %cst_58 : f32 to vector<4x1xf32>
    %96 = arith.mulf %94, %95 : vector<4x1xf32>
    %c0_59 = arith.constant 0 : index
    %c4_60 = arith.constant 4 : index
    %c1_61 = arith.constant 1 : index
    %97 = vector.load %arg6[%c0_59, %c4_60, %c1_61] : memref<2x8x130xf32, #tpu.memory_space<vmem>>, vector<1x4x6xf32>
    %98 = vector.shape_cast %97 : vector<1x4x6xf32> to vector<4x6xf32>
    %cst_62 = arith.constant dense<0.000000e+00> : vector<4xf32>
    %99 = vector.multi_reduction <add>, %98, %cst_62 [1] : vector<4x6xf32> to vector<4xf32>
    %100 = vector.shape_cast %99 : vector<4xf32> to vector<4x1xf32>
    %cst_63 = arith.constant 0.166666672 : f32
    %101 = vector.broadcast %cst_63 : f32 to vector<4x1xf32>
    %102 = arith.mulf %100, %101 : vector<4x1xf32>
    %c0_64 = arith.constant 0 : index
    %c0_65 = arith.constant 0 : index
    %c2_66 = arith.constant 2 : index
    %103 = vector.load %arg6[%c0_64, %c0_65, %c2_66] : memref<2x8x130xf32, #tpu.memory_space<vmem>>, vector<1x4x6xf32>
    %104 = vector.shape_cast %103 : vector<1x4x6xf32> to vector<4x6xf32>
    %cst_67 = arith.constant dense<0.000000e+00> : vector<4xf32>
    %105 = vector.multi_reduction <add>, %104, %cst_67 [1] : vector<4x6xf32> to vector<4xf32>
    %106 = vector.shape_cast %105 : vector<4xf32> to vector<4x1xf32>
    %cst_68 = arith.constant 0.166666672 : f32
    %107 = vector.broadcast %cst_68 : f32 to vector<4x1xf32>
    %108 = arith.mulf %106, %107 : vector<4x1xf32>
    %109 = tpu.concatenate %84, %90, %96, %102, %108 in 1 : vector<4x1xf32>, vector<4x1xf32>, vector<4x1xf32>, vector<4x1xf32>, vector<4x1xf32> -> vector<4x5xf32>
    %cst_69 = arith.constant dense<0.000000e+00> : vector<4x4xf32>
    %110 = tpu.matmul %109, %76, %cst_69 {dimension_numbers = #tpu.dot_dimension_numbers<[1], [0], [0], [1], [0, 0, 1, 1], [], []>} : vector<4x5xf32>, vector<5x4xf32>, vector<4x4xf32> -> vector<4x4xf32>
    %111 = vector.broadcast %78 : vector<1x4xf32> to vector<4x4xf32>
    %112 = arith.addf %110, %111 : vector<4x4xf32>
    %c1_70 = arith.constant 1 : index
    %c0_71 = arith.constant 0 : index
    %c0_72 = arith.constant 0 : index
    %113 = vector.load %arg6[%c1_70, %c0_71, %c0_72] : memref<2x8x130xf32, #tpu.memory_space<vmem>>, vector<1x4x6xf32>
    %114 = vector.shape_cast %113 : vector<1x4x6xf32> to vector<4x6xf32>
    %cst_73 = arith.constant dense<0.000000e+00> : vector<4xf32>
    %115 = vector.multi_reduction <add>, %114, %cst_73 [1] : vector<4x6xf32> to vector<4xf32>
    %116 = vector.shape_cast %115 : vector<4xf32> to vector<4x1xf32>
    %cst_74 = arith.constant 0.166666672 : f32
    %117 = vector.broadcast %cst_74 : f32 to vector<4x1xf32>
    %118 = arith.mulf %116, %117 : vector<4x1xf32>
    %c1_75 = arith.constant 1 : index
    %c4_76 = arith.constant 4 : index
    %c0_77 = arith.constant 0 : index
    %119 = vector.load %arg6[%c1_75, %c4_76, %c0_77] : memref<2x8x130xf32, #tpu.memory_space<vmem>>, vector<1x4x6xf32>
    %120 = vector.shape_cast %119 : vector<1x4x6xf32> to vector<4x6xf32>
    %cst_78 = arith.constant dense<0.000000e+00> : vector<4xf32>
    %121 = vector.multi_reduction <add>, %120, %cst_78 [1] : vector<4x6xf32> to vector<4xf32>
    %122 = vector.shape_cast %121 : vector<4xf32> to vector<4x1xf32>
    %cst_79 = arith.constant 0.166666672 : f32
    %123 = vector.broadcast %cst_79 : f32 to vector<4x1xf32>
    %124 = arith.mulf %122, %123 : vector<4x1xf32>
    %c1_80 = arith.constant 1 : index
    %c0_81 = arith.constant 0 : index
    %c1_82 = arith.constant 1 : index
    %125 = vector.load %arg6[%c1_80, %c0_81, %c1_82] : memref<2x8x130xf32, #tpu.memory_space<vmem>>, vector<1x4x6xf32>
    %126 = vector.shape_cast %125 : vector<1x4x6xf32> to vector<4x6xf32>
    %cst_83 = arith.constant dense<0.000000e+00> : vector<4xf32>
    %127 = vector.multi_reduction <add>, %126, %cst_83 [1] : vector<4x6xf32> to vector<4xf32>
    %128 = vector.shape_cast %127 : vector<4xf32> to vector<4x1xf32>
    %cst_84 = arith.constant 0.166666672 : f32
    %129 = vector.broadcast %cst_84 : f32 to vector<4x1xf32>
    %130 = arith.mulf %128, %129 : vector<4x1xf32>
    %c1_85 = arith.constant 1 : index
    %c4_86 = arith.constant 4 : index
    %c1_87 = arith.constant 1 : index
    %131 = vector.load %arg6[%c1_85, %c4_86, %c1_87] : memref<2x8x130xf32, #tpu.memory_space<vmem>>, vector<1x4x6xf32>
    %132 = vector.shape_cast %131 : vector<1x4x6xf32> to vector<4x6xf32>
    %cst_88 = arith.constant dense<0.000000e+00> : vector<4xf32>
    %133 = vector.multi_reduction <add>, %132, %cst_88 [1] : vector<4x6xf32> to vector<4xf32>
    %134 = vector.shape_cast %133 : vector<4xf32> to vector<4x1xf32>
    %cst_89 = arith.constant 0.166666672 : f32
    %135 = vector.broadcast %cst_89 : f32 to vector<4x1xf32>
    %136 = arith.mulf %134, %135 : vector<4x1xf32>
    %c1_90 = arith.constant 1 : index
    %c0_91 = arith.constant 0 : index
    %c2_92 = arith.constant 2 : index
    %137 = vector.load %arg6[%c1_90, %c0_91, %c2_92] : memref<2x8x130xf32, #tpu.memory_space<vmem>>, vector<1x4x6xf32>
    %138 = vector.shape_cast %137 : vector<1x4x6xf32> to vector<4x6xf32>
    %cst_93 = arith.constant dense<0.000000e+00> : vector<4xf32>
    %139 = vector.multi_reduction <add>, %138, %cst_93 [1] : vector<4x6xf32> to vector<4xf32>
    %140 = vector.shape_cast %139 : vector<4xf32> to vector<4x1xf32>
    %cst_94 = arith.constant 0.166666672 : f32
    %141 = vector.broadcast %cst_94 : f32 to vector<4x1xf32>
    %142 = arith.mulf %140, %141 : vector<4x1xf32>
    %143 = tpu.concatenate %118, %124, %130, %136, %142 in 1 : vector<4x1xf32>, vector<4x1xf32>, vector<4x1xf32>, vector<4x1xf32>, vector<4x1xf32> -> vector<4x5xf32>
    %cst_95 = arith.constant dense<0.000000e+00> : vector<4x4xf32>
    %144 = tpu.matmul %143, %76, %cst_95 {dimension_numbers = #tpu.dot_dimension_numbers<[1], [0], [0], [1], [0, 0, 1, 1], [], []>} : vector<4x5xf32>, vector<5x4xf32>, vector<4x4xf32> -> vector<4x4xf32>
    %145 = vector.broadcast %78 : vector<1x4xf32> to vector<4x4xf32>
    %146 = arith.addf %144, %145 : vector<4x4xf32>
    %147 = tpu.concatenate %112, %146 in 1 : vector<4x4xf32>, vector<4x4xf32> -> vector<4x8xf32>
    %cst_96 = arith.constant dense<0.000000e+00> : vector<4x8xf32>
    %148 = tpu.matmul %73, %147, %cst_96 {dimension_numbers = #tpu.dot_dimension_numbers<[1], [0], [0], [1], [0, 0, 1, 1], [], []>} : vector<4x4xf32>, vector<4x8xf32>, vector<4x8xf32> -> vector<4x8xf32>
    %149 = vector.broadcast %74 : vector<4x1xf32> to vector<4x8xf32>
    %150 = arith.addf %148, %149 : vector<4x8xf32>
    %cst_97 = arith.constant dense<0xFF800000> : vector<8xf32>
    %151 = vector.multi_reduction <maximumf>, %150, %cst_97 [0] : vector<4x8xf32> to vector<8xf32>
    %152 = vector.shape_cast %151 : vector<8xf32> to vector<1x8xf32>
    %153 = vector.broadcast %152 : vector<1x8xf32> to vector<4x8xf32>
    %154 = arith.subf %150, %153 : vector<4x8xf32>
    %155 = math.exp %154 : vector<4x8xf32>
    %cst_98 = arith.constant dense<0.000000e+00> : vector<8xf32>
    %156 = vector.multi_reduction <add>, %155, %cst_98 [0] : vector<4x8xf32> to vector<8xf32>
    %157 = vector.shape_cast %156 : vector<8xf32> to vector<1x8xf32>
    %158 = tpu.reciprocal %157 {approx = true} : vector<1x8xf32> -> vector<1x8xf32>
    %159 = vector.broadcast %158 : vector<1x8xf32> to vector<4x8xf32>
    %160 = arith.mulf %155, %159 : vector<4x8xf32>
    %c0_99 = arith.constant 0 : index
    %c0_100 = arith.constant 0 : index
    %c0_101 = arith.constant 0 : index
    %161 = vector.load %arg6[%c0_99, %c0_100, %c0_101] : memref<2x8x130xf32, #tpu.memory_space<vmem>>, vector<1x4x128xf32>
    %162 = vector.shape_cast %161 : vector<1x4x128xf32> to vector<4x128xf32>
    %163 = vector.broadcast %3 : f32 to vector<4x128xf32>
    %164 = arith.mulf %162, %163 : vector<4x128xf32>
    %c0_102 = arith.constant 0 : index
    %c4_103 = arith.constant 4 : index
    %c0_104 = arith.constant 0 : index
    %165 = vector.load %arg6[%c0_102, %c4_103, %c0_104] : memref<2x8x130xf32, #tpu.memory_space<vmem>>, vector<1x4x128xf32>
    %166 = vector.shape_cast %165 : vector<1x4x128xf32> to vector<4x128xf32>
    %167 = vector.broadcast %15 : f32 to vector<4x128xf32>
    %168 = arith.mulf %166, %167 : vector<4x128xf32>
    %169 = arith.addf %164, %168 : vector<4x128xf32>
    %c0_105 = arith.constant 0 : index
    %c0_106 = arith.constant 0 : index
    %c1_107 = arith.constant 1 : index
    %170 = vector.load %arg6[%c0_105, %c0_106, %c1_107] : memref<2x8x130xf32, #tpu.memory_space<vmem>>, vector<1x4x128xf32>
    %171 = vector.shape_cast %170 : vector<1x4x128xf32> to vector<4x128xf32>
    %172 = vector.broadcast %27 : f32 to vector<4x128xf32>
    %173 = arith.mulf %171, %172 : vector<4x128xf32>
    %174 = arith.addf %169, %173 : vector<4x128xf32>
    %c0_108 = arith.constant 0 : index
    %c4_109 = arith.constant 4 : index
    %c1_110 = arith.constant 1 : index
    %175 = vector.load %arg6[%c0_108, %c4_109, %c1_110] : memref<2x8x130xf32, #tpu.memory_space<vmem>>, vector<1x4x128xf32>
    %176 = vector.shape_cast %175 : vector<1x4x128xf32> to vector<4x128xf32>
    %177 = vector.broadcast %39 : f32 to vector<4x128xf32>
    %178 = arith.mulf %176, %177 : vector<4x128xf32>
    %179 = arith.addf %174, %178 : vector<4x128xf32>
    %c0_111 = arith.constant 0 : index
    %c0_112 = arith.constant 0 : index
    %c2_113 = arith.constant 2 : index
    %180 = vector.load %arg6[%c0_111, %c0_112, %c2_113] : memref<2x8x130xf32, #tpu.memory_space<vmem>>, vector<1x4x128xf32>
    %181 = vector.shape_cast %180 : vector<1x4x128xf32> to vector<4x128xf32>
    %182 = vector.broadcast %51 : f32 to vector<4x128xf32>
    %183 = arith.mulf %181, %182 : vector<4x128xf32>
    %184 = arith.addf %179, %183 : vector<4x128xf32>
    %185 = vector.broadcast %63 : f32 to vector<4x128xf32>
    %186 = arith.addf %184, %185 : vector<4x128xf32>
    %187 = vector.extract_strided_slice %160 {offsets = [0, 0], sizes = [4, 1], strides = [1, 1]} : vector<4x8xf32> to vector<4x1xf32>
    %188 = vector.broadcast %187 : vector<4x1xf32> to vector<4x128xf32>
    %189 = arith.mulf %186, %188 : vector<4x128xf32>
    %c0_114 = arith.constant 0 : index
    %c0_115 = arith.constant 0 : index
    %c0_116 = arith.constant 0 : index
    %190 = vector.load %arg6[%c0_114, %c0_115, %c0_116] : memref<2x8x130xf32, #tpu.memory_space<vmem>>, vector<1x4x128xf32>
    %191 = vector.shape_cast %190 : vector<1x4x128xf32> to vector<4x128xf32>
    %192 = vector.broadcast %6 : f32 to vector<4x128xf32>
    %193 = arith.mulf %191, %192 : vector<4x128xf32>
    %c0_117 = arith.constant 0 : index
    %c4_118 = arith.constant 4 : index
    %c0_119 = arith.constant 0 : index
    %194 = vector.load %arg6[%c0_117, %c4_118, %c0_119] : memref<2x8x130xf32, #tpu.memory_space<vmem>>, vector<1x4x128xf32>
    %195 = vector.shape_cast %194 : vector<1x4x128xf32> to vector<4x128xf32>
    %196 = vector.broadcast %18 : f32 to vector<4x128xf32>
    %197 = arith.mulf %195, %196 : vector<4x128xf32>
    %198 = arith.addf %193, %197 : vector<4x128xf32>
    %c0_120 = arith.constant 0 : index
    %c0_121 = arith.constant 0 : index
    %c1_122 = arith.constant 1 : index
    %199 = vector.load %arg6[%c0_120, %c0_121, %c1_122] : memref<2x8x130xf32, #tpu.memory_space<vmem>>, vector<1x4x128xf32>
    %200 = vector.shape_cast %199 : vector<1x4x128xf32> to vector<4x128xf32>
    %201 = vector.broadcast %30 : f32 to vector<4x128xf32>
    %202 = arith.mulf %200, %201 : vector<4x128xf32>
    %203 = arith.addf %198, %202 : vector<4x128xf32>
    %c0_123 = arith.constant 0 : index
    %c4_124 = arith.constant 4 : index
    %c1_125 = arith.constant 1 : index
    %204 = vector.load %arg6[%c0_123, %c4_124, %c1_125] : memref<2x8x130xf32, #tpu.memory_space<vmem>>, vector<1x4x128xf32>
    %205 = vector.shape_cast %204 : vector<1x4x128xf32> to vector<4x128xf32>
    %206 = vector.broadcast %42 : f32 to vector<4x128xf32>
    %207 = arith.mulf %205, %206 : vector<4x128xf32>
    %208 = arith.addf %203, %207 : vector<4x128xf32>
    %c0_126 = arith.constant 0 : index
    %c0_127 = arith.constant 0 : index
    %c2_128 = arith.constant 2 : index
    %209 = vector.load %arg6[%c0_126, %c0_127, %c2_128] : memref<2x8x130xf32, #tpu.memory_space<vmem>>, vector<1x4x128xf32>
    %210 = vector.shape_cast %209 : vector<1x4x128xf32> to vector<4x128xf32>
    %211 = vector.broadcast %54 : f32 to vector<4x128xf32>
    %212 = arith.mulf %210, %211 : vector<4x128xf32>
    %213 = arith.addf %208, %212 : vector<4x128xf32>
    %214 = vector.broadcast %66 : f32 to vector<4x128xf32>
    %215 = arith.addf %213, %214 : vector<4x128xf32>
    %216 = vector.extract_strided_slice %160 {offsets = [0, 1], sizes = [4, 1], strides = [1, 1]} : vector<4x8xf32> to vector<4x1xf32>
    %217 = vector.broadcast %216 : vector<4x1xf32> to vector<4x128xf32>
    %218 = arith.mulf %215, %217 : vector<4x128xf32>
    %219 = tpu.concatenate %189, %218 in 0 : vector<4x128xf32>, vector<4x128xf32> -> vector<8x128xf32>
    %c0_129 = arith.constant 0 : index
    %c0_130 = arith.constant 0 : index
    %c0_131 = arith.constant 0 : index
    %220 = vector.load %arg9[%c0_129, %c0_130, %c0_131] : memref<2x16x128xf32, #tpu.memory_space<vmem>>, vector<1x8x128xf32>
    %221 = vector.shape_cast %220 : vector<1x8x128xf32> to vector<8x128xf32>
    %222 = vector.shape_cast %219 : vector<8x128xf32> to vector<1x8x128xf32>
    tpu.vector_store %arg9[%c0_129, %c0_130, %c0_131], %222 {strides = array<i32>} : memref<2x16x128xf32, #tpu.memory_space<vmem>>, vector<1x8x128xf32>,
    %c0_132 = arith.constant 0 : index
    %c0_133 = arith.constant 0 : index
    %c0_134 = arith.constant 0 : index
    %223 = vector.load %arg6[%c0_132, %c0_133, %c0_134] : memref<2x8x130xf32, #tpu.memory_space<vmem>>, vector<1x4x128xf32>
    %224 = vector.shape_cast %223 : vector<1x4x128xf32> to vector<4x128xf32>
    %225 = vector.broadcast %9 : f32 to vector<4x128xf32>
    %226 = arith.mulf %224, %225 : vector<4x128xf32>
    %c0_135 = arith.constant 0 : index
    %c4_136 = arith.constant 4 : index
    %c0_137 = arith.constant 0 : index
    %227 = vector.load %arg6[%c0_135, %c4_136, %c0_137] : memref<2x8x130xf32, #tpu.memory_space<vmem>>, vector<1x4x128xf32>
    %228 = vector.shape_cast %227 : vector<1x4x128xf32> to vector<4x128xf32>
    %229 = vector.broadcast %21 : f32 to vector<4x128xf32>
    %230 = arith.mulf %228, %229 : vector<4x128xf32>
    %231 = arith.addf %226, %230 : vector<4x128xf32>
    %c0_138 = arith.constant 0 : index
    %c0_139 = arith.constant 0 : index
    %c1_140 = arith.constant 1 : index
    %232 = vector.load %arg6[%c0_138, %c0_139, %c1_140] : memref<2x8x130xf32, #tpu.memory_space<vmem>>, vector<1x4x128xf32>
    %233 = vector.shape_cast %232 : vector<1x4x128xf32> to vector<4x128xf32>
    %234 = vector.broadcast %33 : f32 to vector<4x128xf32>
    %235 = arith.mulf %233, %234 : vector<4x128xf32>
    %236 = arith.addf %231, %235 : vector<4x128xf32>
    %c0_141 = arith.constant 0 : index
    %c4_142 = arith.constant 4 : index
    %c1_143 = arith.constant 1 : index
    %237 = vector.load %arg6[%c0_141, %c4_142, %c1_143] : memref<2x8x130xf32, #tpu.memory_space<vmem>>, vector<1x4x128xf32>
    %238 = vector.shape_cast %237 : vector<1x4x128xf32> to vector<4x128xf32>
    %239 = vector.broadcast %45 : f32 to vector<4x128xf32>
    %240 = arith.mulf %238, %239 : vector<4x128xf32>
    %241 = arith.addf %236, %240 : vector<4x128xf32>
    %c0_144 = arith.constant 0 : index
    %c0_145 = arith.constant 0 : index
    %c2_146 = arith.constant 2 : index
    %242 = vector.load %arg6[%c0_144, %c0_145, %c2_146] : memref<2x8x130xf32, #tpu.memory_space<vmem>>, vector<1x4x128xf32>
    %243 = vector.shape_cast %242 : vector<1x4x128xf32> to vector<4x128xf32>
    %244 = vector.broadcast %57 : f32 to vector<4x128xf32>
    %245 = arith.mulf %243, %244 : vector<4x128xf32>
    %246 = arith.addf %241, %245 : vector<4x128xf32>
    %247 = vector.broadcast %69 : f32 to vector<4x128xf32>
    %248 = arith.addf %246, %247 : vector<4x128xf32>
    %249 = vector.extract_strided_slice %160 {offsets = [0, 2], sizes = [4, 1], strides = [1, 1]} : vector<4x8xf32> to vector<4x1xf32>
    %250 = vector.broadcast %249 : vector<4x1xf32> to vector<4x128xf32>
    %251 = arith.mulf %248, %250 : vector<4x128xf32>
    %c0_147 = arith.constant 0 : index
    %c0_148 = arith.constant 0 : index
    %c0_149 = arith.constant 0 : index
    %252 = vector.load %arg6[%c0_147, %c0_148, %c0_149] : memref<2x8x130xf32, #tpu.memory_space<vmem>>, vector<1x4x128xf32>
    %253 = vector.shape_cast %252 : vector<1x4x128xf32> to vector<4x128xf32>
    %254 = vector.broadcast %12 : f32 to vector<4x128xf32>
    %255 = arith.mulf %253, %254 : vector<4x128xf32>
    %c0_150 = arith.constant 0 : index
    %c4_151 = arith.constant 4 : index
    %c0_152 = arith.constant 0 : index
    %256 = vector.load %arg6[%c0_150, %c4_151, %c0_152] : memref<2x8x130xf32, #tpu.memory_space<vmem>>, vector<1x4x128xf32>
    %257 = vector.shape_cast %256 : vector<1x4x128xf32> to vector<4x128xf32>
    %258 = vector.broadcast %24 : f32 to vector<4x128xf32>
    %259 = arith.mulf %257, %258 : vector<4x128xf32>
    %260 = arith.addf %255, %259 : vector<4x128xf32>
    %c0_153 = arith.constant 0 : index
    %c0_154 = arith.constant 0 : index
    %c1_155 = arith.constant 1 : index
    %261 = vector.load %arg6[%c0_153, %c0_154, %c1_155] : memref<2x8x130xf32, #tpu.memory_space<vmem>>, vector<1x4x128xf32>
    %262 = vector.shape_cast %261 : vector<1x4x128xf32> to vector<4x128xf32>
    %263 = vector.broadcast %36 : f32 to vector<4x128xf32>
    %264 = arith.mulf %262, %263 : vector<4x128xf32>
    %265 = arith.addf %260, %264 : vector<4x128xf32>
    %c0_156 = arith.constant 0 : index
    %c4_157 = arith.constant 4 : index
    %c1_158 = arith.constant 1 : index
    %266 = vector.load %arg6[%c0_156, %c4_157, %c1_158] : memref<2x8x130xf32, #tpu.memory_space<vmem>>, vector<1x4x128xf32>
    %267 = vector.shape_cast %266 : vector<1x4x128xf32> to vector<4x128xf32>
    %268 = vector.broadcast %48 : f32 to vector<4x128xf32>
    %269 = arith.mulf %267, %268 : vector<4x128xf32>
    %270 = arith.addf %265, %269 : vector<4x128xf32>
    %c0_159 = arith.constant 0 : index
    %c0_160 = arith.constant 0 : index
    %c2_161 = arith.constant 2 : index
    %271 = vector.load %arg6[%c0_159, %c0_160, %c2_161] : memref<2x8x130xf32, #tpu.memory_space<vmem>>, vector<1x4x128xf32>
    %272 = vector.shape_cast %271 : vector<1x4x128xf32> to vector<4x128xf32>
    %273 = vector.broadcast %60 : f32 to vector<4x128xf32>
    %274 = arith.mulf %272, %273 : vector<4x128xf32>
    %275 = arith.addf %270, %274 : vector<4x128xf32>
    %276 = vector.broadcast %72 : f32 to vector<4x128xf32>
    %277 = arith.addf %275, %276 : vector<4x128xf32>
    %278 = vector.extract_strided_slice %160 {offsets = [0, 3], sizes = [4, 1], strides = [1, 1]} : vector<4x8xf32> to vector<4x1xf32>
    %279 = vector.broadcast %278 : vector<4x1xf32> to vector<4x128xf32>
    %280 = arith.mulf %277, %279 : vector<4x128xf32>
    %281 = tpu.concatenate %251, %280 in 0 : vector<4x128xf32>, vector<4x128xf32> -> vector<8x128xf32>
    %c0_162 = arith.constant 0 : index
    %c8 = arith.constant 8 : index
    %c0_163 = arith.constant 0 : index
    %282 = vector.load %arg9[%c0_162, %c8, %c0_163] : memref<2x16x128xf32, #tpu.memory_space<vmem>>, vector<1x8x128xf32>
    %283 = vector.shape_cast %282 : vector<1x8x128xf32> to vector<8x128xf32>
    %284 = vector.shape_cast %281 : vector<8x128xf32> to vector<1x8x128xf32>
    tpu.vector_store %arg9[%c0_162, %c8, %c0_163], %284 {strides = array<i32>} : memref<2x16x128xf32, #tpu.memory_space<vmem>>, vector<1x8x128xf32>,
    %c1_164 = arith.constant 1 : index
    %c0_165 = arith.constant 0 : index
    %c0_166 = arith.constant 0 : index
    %285 = vector.load %arg6[%c1_164, %c0_165, %c0_166] : memref<2x8x130xf32, #tpu.memory_space<vmem>>, vector<1x4x128xf32>
    %286 = vector.shape_cast %285 : vector<1x4x128xf32> to vector<4x128xf32>
    %287 = vector.broadcast %3 : f32 to vector<4x128xf32>
    %288 = arith.mulf %286, %287 : vector<4x128xf32>
    %c1_167 = arith.constant 1 : index
    %c4_168 = arith.constant 4 : index
    %c0_169 = arith.constant 0 : index
    %289 = vector.load %arg6[%c1_167, %c4_168, %c0_169] : memref<2x8x130xf32, #tpu.memory_space<vmem>>, vector<1x4x128xf32>
    %290 = vector.shape_cast %289 : vector<1x4x128xf32> to vector<4x128xf32>
    %291 = vector.broadcast %15 : f32 to vector<4x128xf32>
    %292 = arith.mulf %290, %291 : vector<4x128xf32>
    %293 = arith.addf %288, %292 : vector<4x128xf32>
    %c1_170 = arith.constant 1 : index
    %c0_171 = arith.constant 0 : index
    %c1_172 = arith.constant 1 : index
    %294 = vector.load %arg6[%c1_170, %c0_171, %c1_172] : memref<2x8x130xf32, #tpu.memory_space<vmem>>, vector<1x4x128xf32>
    %295 = vector.shape_cast %294 : vector<1x4x128xf32> to vector<4x128xf32>
    %296 = vector.broadcast %27 : f32 to vector<4x128xf32>
    %297 = arith.mulf %295, %296 : vector<4x128xf32>
    %298 = arith.addf %293, %297 : vector<4x128xf32>
    %c1_173 = arith.constant 1 : index
    %c4_174 = arith.constant 4 : index
    %c1_175 = arith.constant 1 : index
    %299 = vector.load %arg6[%c1_173, %c4_174, %c1_175] : memref<2x8x130xf32, #tpu.memory_space<vmem>>, vector<1x4x128xf32>
    %300 = vector.shape_cast %299 : vector<1x4x128xf32> to vector<4x128xf32>
    %301 = vector.broadcast %39 : f32 to vector<4x128xf32>
    %302 = arith.mulf %300, %301 : vector<4x128xf32>
    %303 = arith.addf %298, %302 : vector<4x128xf32>
    %c1_176 = arith.constant 1 : index
    %c0_177 = arith.constant 0 : index
    %c2_178 = arith.constant 2 : index
    %304 = vector.load %arg6[%c1_176, %c0_177, %c2_178] : memref<2x8x130xf32, #tpu.memory_space<vmem>>, vector<1x4x128xf32>
    %305 = vector.shape_cast %304 : vector<1x4x128xf32> to vector<4x128xf32>
    %306 = vector.broadcast %51 : f32 to vector<4x128xf32>
    %307 = arith.mulf %305, %306 : vector<4x128xf32>
    %308 = arith.addf %303, %307 : vector<4x128xf32>
    %309 = vector.broadcast %63 : f32 to vector<4x128xf32>
    %310 = arith.addf %308, %309 : vector<4x128xf32>
    %311 = vector.extract_strided_slice %160 {offsets = [0, 4], sizes = [4, 1], strides = [1, 1]} : vector<4x8xf32> to vector<4x1xf32>
    %312 = vector.broadcast %311 : vector<4x1xf32> to vector<4x128xf32>
    %313 = arith.mulf %310, %312 : vector<4x128xf32>
    %c1_179 = arith.constant 1 : index
    %c0_180 = arith.constant 0 : index
    %c0_181 = arith.constant 0 : index
    %314 = vector.load %arg6[%c1_179, %c0_180, %c0_181] : memref<2x8x130xf32, #tpu.memory_space<vmem>>, vector<1x4x128xf32>
    %315 = vector.shape_cast %314 : vector<1x4x128xf32> to vector<4x128xf32>
    %316 = vector.broadcast %6 : f32 to vector<4x128xf32>
    %317 = arith.mulf %315, %316 : vector<4x128xf32>
    %c1_182 = arith.constant 1 : index
    %c4_183 = arith.constant 4 : index
    %c0_184 = arith.constant 0 : index
    %318 = vector.load %arg6[%c1_182, %c4_183, %c0_184] : memref<2x8x130xf32, #tpu.memory_space<vmem>>, vector<1x4x128xf32>
    %319 = vector.shape_cast %318 : vector<1x4x128xf32> to vector<4x128xf32>
    %320 = vector.broadcast %18 : f32 to vector<4x128xf32>
    %321 = arith.mulf %319, %320 : vector<4x128xf32>
    %322 = arith.addf %317, %321 : vector<4x128xf32>
    %c1_185 = arith.constant 1 : index
    %c0_186 = arith.constant 0 : index
    %c1_187 = arith.constant 1 : index
    %323 = vector.load %arg6[%c1_185, %c0_186, %c1_187] : memref<2x8x130xf32, #tpu.memory_space<vmem>>, vector<1x4x128xf32>
    %324 = vector.shape_cast %323 : vector<1x4x128xf32> to vector<4x128xf32>
    %325 = vector.broadcast %30 : f32 to vector<4x128xf32>
    %326 = arith.mulf %324, %325 : vector<4x128xf32>
    %327 = arith.addf %322, %326 : vector<4x128xf32>
    %c1_188 = arith.constant 1 : index
    %c4_189 = arith.constant 4 : index
    %c1_190 = arith.constant 1 : index
    %328 = vector.load %arg6[%c1_188, %c4_189, %c1_190] : memref<2x8x130xf32, #tpu.memory_space<vmem>>, vector<1x4x128xf32>
    %329 = vector.shape_cast %328 : vector<1x4x128xf32> to vector<4x128xf32>
    %330 = vector.broadcast %42 : f32 to vector<4x128xf32>
    %331 = arith.mulf %329, %330 : vector<4x128xf32>
    %332 = arith.addf %327, %331 : vector<4x128xf32>
    %c1_191 = arith.constant 1 : index
    %c0_192 = arith.constant 0 : index
    %c2_193 = arith.constant 2 : index
    %333 = vector.load %arg6[%c1_191, %c0_192, %c2_193] : memref<2x8x130xf32, #tpu.memory_space<vmem>>, vector<1x4x128xf32>
    %334 = vector.shape_cast %333 : vector<1x4x128xf32> to vector<4x128xf32>
    %335 = vector.broadcast %54 : f32 to vector<4x128xf32>
    %336 = arith.mulf %334, %335 : vector<4x128xf32>
    %337 = arith.addf %332, %336 : vector<4x128xf32>
    %338 = vector.broadcast %66 : f32 to vector<4x128xf32>
    %339 = arith.addf %337, %338 : vector<4x128xf32>
    %340 = vector.extract_strided_slice %160 {offsets = [0, 5], sizes = [4, 1], strides = [1, 1]} : vector<4x8xf32> to vector<4x1xf32>
    %341 = vector.broadcast %340 : vector<4x1xf32> to vector<4x128xf32>
    %342 = arith.mulf %339, %341 : vector<4x128xf32>
    %343 = tpu.concatenate %313, %342 in 0 : vector<4x128xf32>, vector<4x128xf32> -> vector<8x128xf32>
    %c1_194 = arith.constant 1 : index
    %c0_195 = arith.constant 0 : index
    %c0_196 = arith.constant 0 : index
    %344 = vector.load %arg9[%c1_194, %c0_195, %c0_196] : memref<2x16x128xf32, #tpu.memory_space<vmem>>, vector<1x8x128xf32>
    %345 = vector.shape_cast %344 : vector<1x8x128xf32> to vector<8x128xf32>
    %346 = vector.shape_cast %343 : vector<8x128xf32> to vector<1x8x128xf32>
    tpu.vector_store %arg9[%c1_194, %c0_195, %c0_196], %346 {strides = array<i32>} : memref<2x16x128xf32, #tpu.memory_space<vmem>>, vector<1x8x128xf32>,
    %c1_197 = arith.constant 1 : index
    %c0_198 = arith.constant 0 : index
    %c0_199 = arith.constant 0 : index
    %347 = vector.load %arg6[%c1_197, %c0_198, %c0_199] : memref<2x8x130xf32, #tpu.memory_space<vmem>>, vector<1x4x128xf32>
    %348 = vector.shape_cast %347 : vector<1x4x128xf32> to vector<4x128xf32>
    %349 = vector.broadcast %9 : f32 to vector<4x128xf32>
    %350 = arith.mulf %348, %349 : vector<4x128xf32>
    %c1_200 = arith.constant 1 : index
    %c4_201 = arith.constant 4 : index
    %c0_202 = arith.constant 0 : index
    %351 = vector.load %arg6[%c1_200, %c4_201, %c0_202] : memref<2x8x130xf32, #tpu.memory_space<vmem>>, vector<1x4x128xf32>
    %352 = vector.shape_cast %351 : vector<1x4x128xf32> to vector<4x128xf32>
    %353 = vector.broadcast %21 : f32 to vector<4x128xf32>
    %354 = arith.mulf %352, %353 : vector<4x128xf32>
    %355 = arith.addf %350, %354 : vector<4x128xf32>
    %c1_203 = arith.constant 1 : index
    %c0_204 = arith.constant 0 : index
    %c1_205 = arith.constant 1 : index
    %356 = vector.load %arg6[%c1_203, %c0_204, %c1_205] : memref<2x8x130xf32, #tpu.memory_space<vmem>>, vector<1x4x128xf32>
    %357 = vector.shape_cast %356 : vector<1x4x128xf32> to vector<4x128xf32>
    %358 = vector.broadcast %33 : f32 to vector<4x128xf32>
    %359 = arith.mulf %357, %358 : vector<4x128xf32>
    %360 = arith.addf %355, %359 : vector<4x128xf32>
    %c1_206 = arith.constant 1 : index
    %c4_207 = arith.constant 4 : index
    %c1_208 = arith.constant 1 : index
    %361 = vector.load %arg6[%c1_206, %c4_207, %c1_208] : memref<2x8x130xf32, #tpu.memory_space<vmem>>, vector<1x4x128xf32>
    %362 = vector.shape_cast %361 : vector<1x4x128xf32> to vector<4x128xf32>
    %363 = vector.broadcast %45 : f32 to vector<4x128xf32>
    %364 = arith.mulf %362, %363 : vector<4x128xf32>
    %365 = arith.addf %360, %364 : vector<4x128xf32>
    %c1_209 = arith.constant 1 : index
    %c0_210 = arith.constant 0 : index
    %c2_211 = arith.constant 2 : index
    %366 = vector.load %arg6[%c1_209, %c0_210, %c2_211] : memref<2x8x130xf32, #tpu.memory_space<vmem>>, vector<1x4x128xf32>
    %367 = vector.shape_cast %366 : vector<1x4x128xf32> to vector<4x128xf32>
    %368 = vector.broadcast %57 : f32 to vector<4x128xf32>
    %369 = arith.mulf %367, %368 : vector<4x128xf32>
    %370 = arith.addf %365, %369 : vector<4x128xf32>
    %371 = vector.broadcast %69 : f32 to vector<4x128xf32>
    %372 = arith.addf %370, %371 : vector<4x128xf32>
    %373 = vector.extract_strided_slice %160 {offsets = [0, 6], sizes = [4, 1], strides = [1, 1]} : vector<4x8xf32> to vector<4x1xf32>
    %374 = vector.broadcast %373 : vector<4x1xf32> to vector<4x128xf32>
    %375 = arith.mulf %372, %374 : vector<4x128xf32>
    %c1_212 = arith.constant 1 : index
    %c0_213 = arith.constant 0 : index
    %c0_214 = arith.constant 0 : index
    %376 = vector.load %arg6[%c1_212, %c0_213, %c0_214] : memref<2x8x130xf32, #tpu.memory_space<vmem>>, vector<1x4x128xf32>
    %377 = vector.shape_cast %376 : vector<1x4x128xf32> to vector<4x128xf32>
    %378 = vector.broadcast %12 : f32 to vector<4x128xf32>
    %379 = arith.mulf %377, %378 : vector<4x128xf32>
    %c1_215 = arith.constant 1 : index
    %c4_216 = arith.constant 4 : index
    %c0_217 = arith.constant 0 : index
    %380 = vector.load %arg6[%c1_215, %c4_216, %c0_217] : memref<2x8x130xf32, #tpu.memory_space<vmem>>, vector<1x4x128xf32>
    %381 = vector.shape_cast %380 : vector<1x4x128xf32> to vector<4x128xf32>
    %382 = vector.broadcast %24 : f32 to vector<4x128xf32>
    %383 = arith.mulf %381, %382 : vector<4x128xf32>
    %384 = arith.addf %379, %383 : vector<4x128xf32>
    %c1_218 = arith.constant 1 : index
    %c0_219 = arith.constant 0 : index
    %c1_220 = arith.constant 1 : index
    %385 = vector.load %arg6[%c1_218, %c0_219, %c1_220] : memref<2x8x130xf32, #tpu.memory_space<vmem>>, vector<1x4x128xf32>
    %386 = vector.shape_cast %385 : vector<1x4x128xf32> to vector<4x128xf32>
    %387 = vector.broadcast %36 : f32 to vector<4x128xf32>
    %388 = arith.mulf %386, %387 : vector<4x128xf32>
    %389 = arith.addf %384, %388 : vector<4x128xf32>
    %c1_221 = arith.constant 1 : index
    %c4_222 = arith.constant 4 : index
    %c1_223 = arith.constant 1 : index
    %390 = vector.load %arg6[%c1_221, %c4_222, %c1_223] : memref<2x8x130xf32, #tpu.memory_space<vmem>>, vector<1x4x128xf32>
    %391 = vector.shape_cast %390 : vector<1x4x128xf32> to vector<4x128xf32>
    %392 = vector.broadcast %48 : f32 to vector<4x128xf32>
    %393 = arith.mulf %391, %392 : vector<4x128xf32>
    %394 = arith.addf %389, %393 : vector<4x128xf32>
    %c1_224 = arith.constant 1 : index
    %c0_225 = arith.constant 0 : index
    %c2_226 = arith.constant 2 : index
    %395 = vector.load %arg6[%c1_224, %c0_225, %c2_226] : memref<2x8x130xf32, #tpu.memory_space<vmem>>, vector<1x4x128xf32>
    %396 = vector.shape_cast %395 : vector<1x4x128xf32> to vector<4x128xf32>
    %397 = vector.broadcast %60 : f32 to vector<4x128xf32>
    %398 = arith.mulf %396, %397 : vector<4x128xf32>
    %399 = arith.addf %394, %398 : vector<4x128xf32>
    %400 = vector.broadcast %72 : f32 to vector<4x128xf32>
    %401 = arith.addf %399, %400 : vector<4x128xf32>
    %402 = vector.extract_strided_slice %160 {offsets = [0, 7], sizes = [4, 1], strides = [1, 1]} : vector<4x8xf32> to vector<4x1xf32>
    %403 = vector.broadcast %402 : vector<4x1xf32> to vector<4x128xf32>
    %404 = arith.mulf %401, %403 : vector<4x128xf32>
    %405 = tpu.concatenate %375, %404 in 0 : vector<4x128xf32>, vector<4x128xf32> -> vector<8x128xf32>
    %c1_227 = arith.constant 1 : index
    %c8_228 = arith.constant 8 : index
    %c0_229 = arith.constant 0 : index
    %406 = vector.load %arg9[%c1_227, %c8_228, %c0_229] : memref<2x16x128xf32, #tpu.memory_space<vmem>>, vector<1x8x128xf32>
    %407 = vector.shape_cast %406 : vector<1x8x128xf32> to vector<8x128xf32>
    %408 = vector.shape_cast %405 : vector<8x128xf32> to vector<1x8x128xf32>
    tpu.vector_store %arg9[%c1_227, %c8_228, %c0_229], %408 {strides = array<i32>} : memref<2x16x128xf32, #tpu.memory_space<vmem>>, vector<1x8x128xf32>,
    return
  }
  func.func @transform_0(%arg0: i32, %arg1: i32) -> (i32, i32) {
    %c0_i32 = arith.constant 0 : i32
    %c0_i32_0 = arith.constant 0 : i32
    %c0_i32_1 = arith.constant 0 : i32
    return %c0_i32, %c0_i32_0 : i32, i32
  }
  func.func @transform_1(%arg0: i32, %arg1: i32) -> i32 {
    %c0_i32 = arith.constant 0 : i32
    %c0_i32_0 = arith.constant 0 : i32
    return %c0_i32 : i32
  }
  func.func @transform_2(%arg0: i32, %arg1: i32) -> (i32, i32, i32) {
    %c0_i32 = arith.constant 0 : i32
    %c0_i32_0 = arith.constant 0 : i32
    %c0_i32_1 = arith.constant 0 : i32
    return %arg1, %c0_i32, %c0_i32_0 : i32, i32, i32
  }
  func.func @transform_3(%arg0: i32, %arg1: i32) -> (i32, i32, i32) {
    %c0_i32 = arith.constant 0 : i32
    %c0_i32_0 = arith.constant 0 : i32
    %c0_i32_1 = arith.constant 0 : i32
    return %arg1, %c0_i32, %c0_i32_0 : i32, i32, i32
  }
  func.func @transform_4(%arg0: i32, %arg1: i32) -> (i32, i32, i32) {
    %c0_i32 = arith.constant 0 : i32
    %c0_i32_0 = arith.constant 0 : i32
    %c0_i32_1 = arith.constant 0 : i32
    return %arg0, %c0_i32, %c0_i32_0 : i32, i32, i32
  }
  func.func @transform_5(%arg0: i32, %arg1: i32) -> (i32, i32) {
    %c0_i32 = arith.constant 0 : i32
    %c0_i32_0 = arith.constant 0 : i32
    %c0_i32_1 = arith.constant 0 : i32
    return %c0_i32, %c0_i32_0 : i32, i32
  }
  func.func @transform_6(%arg0: i32, %arg1: i32) -> (i32, i32) {
    %c0_i32 = arith.constant 0 : i32
    %c0_i32_0 = arith.constant 0 : i32
    %c0_i32_1 = arith.constant 0 : i32
    return %c0_i32, %c0_i32_0 : i32, i32
  }
  func.func @transform_7(%arg0: i32, %arg1: i32) -> (i32, i32, i32) {
    %c0_i32 = arith.constant 0 : i32
    %c0_i32_0 = arith.constant 0 : i32
    return %arg0, %arg1, %c0_i32 : i32, i32, i32
  }
}

</mosaic_0001>

<bundles_post_ra>
// kernel: tpu_custom_call.1
= control target key start
LH: loop header
LB: loop body
LE: loop exit
PB: predicated region body
PF: predicated region fallthrough
CT: control target
= control target key end

     0   :  { %s2543_s0 = inlined_call_operand.hbm [shape: f32[5,8], index: 0, kind: input, shape index: {}]   ;;  %s2544_s1 = inlined_call_operand.hbm [shape: f32[8], index: 1, kind: input, shape index: {}]   ;;  %s2545_s2 = inlined_call_operand.vmem [shape: f32[2,5,4], index: 2, kind: input, shape index: {}]   ;;  %s2546_s3 = inlined_call_operand.hbm [shape: f32[2,1,4], index: 3, kind: input, shape index: {}]   ;;  %s2547_s4 = inlined_call_operand.vmem [shape: f32[2,8,130], index: 4, kind: input, shape index: {}]   ;;  %s2548_s5 = inlined_call_operand.vmem [shape: f32[4,4], index: 5, kind: input, shape index: {}]   ;;  %s2549_s6 = inlined_call_operand.vmem [shape: f32[4,1], index: 6, kind: input, shape index: {}]   ;;  %s2550_s7 = inlined_call_operand.hbm [shape: f32[2,32,128], index: 7, kind: output, shape index: {}]  }
   0x1   :  { %2564 = sst [smem:[#allocation24_spill]] %s2543_s0 }
   0x2   :  { %2565 = sst [smem:[#allocation25_spill]] %s2544_s1 }
   0x3   :  { %2566 = sst [smem:[#allocation26_spill]] %s2545_s2 }
   0x4   :  { %2567 = sst [smem:[#allocation27_spill]] %s2546_s3 }
   0x5   :  { %2568 = sst [smem:[#allocation28_spill]] %s2549_s6 }
   0x6   :  { %12 = vsyncpa [#allocation5], 0 }
   0x7   :  { %13 = vsyncpa [#allocation7], 0 }
   0x8   :  { %14 = vsyncpa [#allocation3], 0 }
   0x9   :  { %16 = vsyncpa [#allocation3 + $0x1], 0 }
   0xa   :  { %17 = vsyncpa [#allocation4], 0 }
   0xb   :  { %19 = vsyncpa [#allocation4 + $0x1], 0  ;;  %s1842_s24 = smov 0   ;;  %s1844_s25 = smov 0  }
   0xc   :  { %s1846_s26 = smov 0   ;;  %s1848_s27 = smov 0  }
   0xd   :  { %s1850_s28 = smov 0   ;;  %s1852_s29 = smov 0  }
   0xe LB: > { %2569 = sst [smem:[#allocation16_spill]] %s1757_s24  ;;  %s1435_s30 = sadd.s32 4294967295, %s1777_s29   ;;  %s1777_s29 = sphi %s1852_s29, %s25_s29   ;;  %s1773_s28 = sphi %s1850_s28, %s2601_s28   ;;  %s1769_s27 = sphi %s1848_s27, %s2600_s27   ;;  %s1765_s26 = sphi %s1846_s26, %s2599_s26   ;;  %s1761_s25 = sphi %s1844_s25, %s2598_s25   ;;  %s1757_s24 = sphi %s1842_s24, %s2597_s24  }
   0xf   : > { %2570 = sst [smem:[#allocation17_spill]] %s1761_s25  ;;  %s1436_s8 = sadd.s32 4294967294, %s1777_s29  }
  0x10   : > { %2571 = sst [smem:[#allocation18_spill]] %s1765_s26  ;;  %p125_p0 = scmp.ne.s32.totalorder %s1761_s25, %s1757_s24 }
  0x11   : > { %2572 = sst [smem:[#allocation19_spill]] %s1773_s28  ;;  %p1876_p1 = scmp.eq.s32.totalorder %s1435_s30, 0 }
  0x12   : > { %2573 = sst [smem:[#allocation20_spill]] %s1777_s29  ;;  %p1880_p2 = scmp.eq.s32.totalorder %s1435_s30, 1 }
  0x13   : > { %p225_p3 = scmp.eq.s32.totalorder %s1436_s8, 1  ;;  %p1886_p4 = por %p1876_p1, %p125_p0 }
  0x14   : > { %p1437_p5 = scmp.ge.s32.totalorder %s1777_s29, 1  ;;  %p232_p7 = scmp.lt.s32.totalorder %s1777_s29, 3 }
  0x15   : > { %p1891_p6 = por %p225_p3, %p125_p0  ;;  %s34_s14 = sadd.s32 1, %s1773_s28 }
  0x16   : > { %p1896_p8 = pnand %p1437_p5, %p232_p7  ;;  %p35_p12 = scmp.ge.s32.totalorder %s34_s14, 2 }
  0x17   : > { %s2577_s12 = scalar_select %p1891_p6, 1, 0 }
  0x18   : > { %p1561_p10 = pneg %p1896_p8  ;;  %s112_s15 = sadd.s32 1, %s1765_s26 }
  0x19   : > { %2578 = sst [smem:[#allocation21_spill]] %s2577_s12  ;;  %p119_p13 = scmp.ne.s32.totalorder %s1765_s26, %s1761_s25 }
  0x1a   : > { %p1562_p11 = pnand %p1561_p10, %p1876_p1  ;;  %s1779_s16 = smov [#allocation2]  }
  0x1b   : > { %s2580_s0 = sld [smem:[#allocation24_spill]]  ;;  %s1780_s19 = smov [#allocation6]  }
  0x1c   : > { %s2581_s1 = sld [smem:[#allocation25_spill]]  ;;  %s2603_s14 = smov (%p35_p12, %s34_s14), 0 }
  0x1d   : > { %2582 = sst [smem:[#allocation22_spill]] %s2603_s14  ;;  %p120_p0 = scmp.eq.s32.totalorder %s1777_s29, 0 }
  0x1e   : > { %p1920_p3 = por %p1880_p2, %p119_p13  ;;  %s109_s23 = ssub.s32 %s1773_s28, %s2603_s14 }
  0x1f   : > { %p1578_p5 = scmp.lt.s32.totalorder %s1777_s29, 2  ;;  %p110_p7 = scmp.eq.s32.totalorder %s109_s23, 0 }
  0x20   : > { %s2583_s22 = scalar_select %p1920_p3, 1, 0 }
  0x21   : > { %1564 = dma.hbm_to_smem (!%p1562_p11), %s2580_s0, 128, %s1779_s16, [#allocation5]  }
  0x22   : > { %1567 = dma.hbm_to_smem (!%p1562_p11), %s2581_s1, 16, %s1780_s19, [#allocation7]  }
  0x23   : > { %p121_p10 = por %p120_p0, %p119_p13  ;;  %s286_s30 = sand.u32 1, %s1765_s26  }
  0x24   : > { %s1442_s8 = sshll.u32 %s1773_s28, 4  ;;  %s2585_s3 = sld [smem:[#allocation27_spill]] }
  0x25   : > { %s1930_s16 = scalar_select %p110_p7, %s1765_s26, %s112_s15  }
  0x26   : > { %s289_s20 = scalar_lea.vmem [#allocation8], %s286_s30  ;;  %p1935_p11 = pnand %p1578_p5, %p121_p10 }
  0x27   : > { %2584 = sst [smem:[#allocation23_spill]] %s1930_s16  ;;  %s296_s21 = sshll.u32 %s289_s20, 4  ;;  %s297_s21 = int_to_ptr.vmem [resolvable:$true] %s296_s21 }
  0x28   : > { %s287_s0 = scalar_lea.sflag [#allocation3], %s286_s30  ;;  %p1689_p2 = pneg %p1935_p11 }
  0x29   : > { %s1700_s23 = scalar_lea.vmem %s297_s21, 16  ;;  %s1781_s15 = smov [#allocation8]  }
  0x2a   : > { %s294_s19 = scalar_lea.hbm %s2585_s3, %s1442_s8  ;;  %p1701_p12 = scmp.ne.s32.totalorder %s297_s21, %s1700_s23 }
  0x2b   : > { %s1705_s1 = sshll.u32 %s1781_s15, 4  ;;  %s1706_s1 = int_to_ptr.vmem [resolvable:$false] %s1705_s1 }
  0x2c   : > { %p1703_p13 = pnand %p1701_p12, %p1689_p2  ;;  %s1707_s17 = scalar_lea.vmem %s1706_s1, 32 }
  0x2d   : > { %p1708_p7 = scmp.lt.s32.totalorder %s297_s21, %s1706_s1  ;;  %p1709_p9 = scmp.lt.s32.totalorder %s1707_s17, %s1700_s23 }
  0x2e   : > { %p1704_p0 = pneg %p1703_p13 }
  0x2f   : > { %p1710_p6 = por %p1709_p9, %p1708_p7 }
  0x31   : > { %p1711_p3 = pnand %p1710_p6, %p1704_p0 }
  0x33   : > { %1714 = shalt.err (!%p1711_p3)
}
  0x34   : > { %1571 = dma.hbm_to_vmem [thread:$0]  (!%p1935_p11), %s294_s19, 16, %s297_s21, %s287_s0  }
  0x35   : > { %305 = sbr.rel (%p1896_p8) target bundleno = 1075 (0x433), region = 48 }
  0x3a   : > { %1740 = dma.done.wait (%p1876_p1), [#allocation5], 128  }
  0x3b   : > { %1742 = vsyncadd (%p1876_p1), [#allocation5], 4294967168 }
  0x3c   : > { %1744 = dma.done.wait (%p1876_p1), [#allocation7], 16  }
  0x3d   : > { %1746 = vsyncadd (%p1876_p1), [#allocation7], 4294967280  ;;  %s1954_s1 = sand.u32 1, %s1761_s25  }
  0x3e   : > { %s316_s0 = scalar_lea.sflag [#allocation3], %s1954_s1  ;;  %s318_s13 = scalar_lea.vmem [#allocation8], %s1954_s1 }
  0x3f   : > { %1748 = dma.done.wait (%p1886_p4), %s316_s0, 16  }
  0x40   : > { %1750 = vsyncadd (%p1886_p4), %s316_s0, 4294967280 }
  0x41   : > { %323 = sfence }
  0x42   : > { %v1469_v0 = vld [vmem:[%s2547_s4 + $0x10] sm:$0xf0]  ;;  %v1468_v1 = vld [vmem:[%s2547_s4 + $0x10] sm:$0xf]  ;;  %s2552_s19 = smov 127   ;;  %s2554_s20 = smov 126  }
  0x43   : > { %621 = vrot.lane.b32.xlu0 %v1469_v0, %s2552_s19  ;;  %628 = vrot.lane.b32.xlu1 %v1468_v1, %s2554_s20  ;;  %v1974_v2 = vld [vmem:[%s2547_s4] sm:$0xf0]  ;;  %v1981_v3 = vld [vmem:[%s2547_s4] sm:$0xf]  ;;  %vm475_vm0 = vcmask 48132   ;;  %vm469_vm1 = vcmask 44032  }
  0x44   : > { %v608_v4 = vsel %vm475_vm0, %v1469_v0, 0.0  ;;  %v603_v5 = vsel %vm469_vm1, %v1468_v1, 0.0  ;;  %v476_v12 = vsel %vm475_vm0, %v1974_v2, 0.0  ;;  %v470_v14 = vsel %vm469_vm1, %v1981_v3, 0.0  ;;  %p359_p1 = scmp.lt.s32.totalorder %s1769_s27, 1  ;;  %s2587_s2 = sld [smem:[#allocation26_spill]] }
  0x45   : > { %vm527_vm2 = vcmask 1044480   ;;  %v1784_v17 = vmov 0.0   ;;  %vm1785_vm3 = vmmov 0   ;;  %vm509_vm4 = vcmask 7168   ;;  %s2588_s6 = sld [smem:[#allocation28_spill]]  ;;  %s2021_s21 = sshll.u32 %s1769_s27, 2 }
  0x46   : > { %s360_s15 = scalar_select %p359_p1, %s1769_s27, 1  ;;  %1533 = vmatprep.subr.mxu1 %v1784_v17  ;;  %1535 = vmatprep.mubr.msk.f32.mxu1 %vm1785_vm3, %v1784_v17  ;;  %vm511_vm5 = vcmask 15360   ;;  %vm513_vm6 = vcmask 23552   ;;  %vm515_vm7 = vcmask 31744   ;;  %vm523_vm8 = vcmask 39936  }
  0x47   : > { %613 = vrot.lane.b32.xlu0 %v1468_v1, %s2552_s19  ;;  %1528 = vmatprep.subr.mxu0 %v1784_v17  ;;  %v1786_v55 = vmov 0   ;;  %s380_s11 = sshra.s32 %s2021_s21, 7  ;;  %s2025_s10 = sand.u32 127, %s2021_s21  ;;  %v2042_v56 = vld [vmem:[%s318_s13] ss:$0 sm:$0xff]  ;;  %vm731_vm9 = vcmask 1043456  }
  0x48   : > { %s1447_s17 = sshll.u32 %s360_s15, 3  ;;  %1530 = vmatprep.mubr.msk.f32.mxu0 %vm1785_vm3, %v1784_v17  ;;  %1652 = vset.pattern.permute.xlu1 %v1786_v55  ;;  %s2027_s23 = sshll.u32 %s380_s11, 7  ;;  %v834_v59 = vld [vmem:[%s2547_s4 + $0x8] sm:$0xf]  ;;  %v2064_v63 = vld [vmem:[%s2547_s4] sm:$0xf] }
  0x49   : > { %1653 = vset.pattern.permute.xlu0 %v1786_v55  ;;  %s2030_s15 = sadd.s32 1, %s2021_s21  ;;  %s2054_s14 = sadd.s32 2, %s2021_s21  ;;  %vm844_vm10 = vcmask 1039360   ;;  %vm873_vm11 = vcmask 1031168   ;;  %vm805_vm12 = vcmask 60416  }
  0x4a   : > { %s362_s8 = scalar_lea.vmem %s2587_s2, %s1447_s17  ;;  %s1514_s17 = sadd.s32 512, %s2027_s23 }
  0x4b   : > { %489 = vrot.lane.b32.xlu0 %v1974_v2, %s2552_s19  ;;  %v466_v18 = vld [vmem:[%s362_s8] sm:$0x1f]  ;;  %s388_s0 = sshra.s32 %s2030_s15, 7  ;;  %s446_s30 = sadd.s32 %s1514_s17, %s2025_s10 }
  0x4c   : > { %1534 = vmatpush3.msk.msra.mxu1 %vm527_vm2, %v466_v18  ;;  %1529 = vmatpush3.msk.msra.mxu0 %vm527_vm2, %v466_v18  ;;  %v465_v54 = vld [vmem:[%s2588_s6] sm:$0xf]  ;;  %s2035_s8 = sshll.u32 %s388_s0, 7  ;;  %s447_s9 = sld [smem:[#allocation2 + %s446_s30]] }
  0x4d   : > { %1538 = vmatprep.subr.mxu0 %v1784_v17  ;;  %s2038_s18 = sand.u32 127, %s2030_s15  ;;  %s1500_s11 = sadd.s32 256, %s2035_s8 }
  0x4e   : > { %s1516_s0 = sadd.s32 512, %s2035_s8  ;;  %s1787_s13 = smov 4  }
  0x4f   : > { %481 = vrot.lane.b32.xlu0 %v1981_v3, %s2552_s19  ;;  %s1508_s19 = sadd.s32 384, %s2035_s8  ;;  %s1498_s3 = sadd.s32 256, %s2027_s23 }
  0x50   : > { %s434_s2 = sadd.s32 %s1508_s19, %s2038_s18  ;;  %s450_s19 = sadd.s32 %s1516_s0, %s2038_s18 }
  0x51   : > { %s435_s6 = sld [smem:[#allocation2 + %s434_s2]]  ;;  %s2070_s30 = sand.u32 127, %s2054_s14 }
  0x52   : > { %v2056_v61 = vstv %s447_s9  ;;  %s2590_s29 = smov 127   ;;  %s2091_s24 = sadd.s32 3, %s2021_s21 }
  0x53   : > { %v866_v62 = vmul.f32 %v2056_v61, %v834_v59  ;;  %s1506_s28 = sadd.s32 384, %s2027_s23 }
  0x67   : > { %609 = vadd.xlane.f32.xlu1 %v608_v4  ;;  %v849_v4 = vld [vmem:[%s2547_s4 + $0x8] sm:$0xf0] }
  0x6e   : > { %604 = vadd.xlane.f32.xlu0 %v603_v5  ;;  %v2081_v5 = vstv %s435_s6  ;;  %s430_s6 = sadd.s32 %s1506_s28, %s2025_s10  ;;  %s2124_s28 = sand.u32 127, %s2091_s24 }
  0x84   : > { %496 = vrot.lane.b32.xlu0 %v1981_v3, %s2554_s20  ;;  %s418_s20 = sadd.s32 %s1500_s11, %s2038_s18  ;;  %s414_s11 = sadd.s32 %s1498_s3, %s2025_s10 }
  0x85   : > { %s419_s17 = sld [smem:[#allocation2 + %s418_s20]]  ;;  %s396_s20 = sshra.s32 %s2054_s14, 7 }
  0x86   : > { %s2066_s2 = sshll.u32 %s396_s20, 7  ;;  %s451_s20 = sld [smem:[#allocation2 + %s450_s19]] }
  0x87   : > { %s1502_s9 = sadd.s32 256, %s2066_s2  ;;  %s1510_s26 = sadd.s32 384, %s2066_s2 }
  0x88   : > { %s422_s16 = sadd.s32 %s1502_s9, %s2070_s30  ;;  %s415_s25 = sld [smem:[#allocation2 + %s414_s11]] }
  0x89   : > { %s438_s12 = sadd.s32 %s1510_s26, %s2070_s30  ;;  %s431_s19 = sld [smem:[#allocation2 + %s430_s6]] }
  0x8a   : > { %s439_s3 = sld [smem:[#allocation2 + %s438_s12]]  ;;  %s404_s9 = sshra.s32 %s2091_s24, 7 }
  0x8b   : > { %v2074_v0 = vstv %s419_s17  ;;  %s423_s17 = sld [smem:[#allocation2 + %s422_s16]]  ;;  %s1518_s26 = sadd.s32 512, %s2066_s2 }
  0x8c   : > { %v894_v1 = vmul.f32 %v2074_v0, %v2064_v63  ;;  %s2108_s16 = sshll.u32 %s404_s9, 7  ;;  %s454_s11 = sadd.s32 %s1518_s26, %s2070_s30 }
  0x8d   : > { %s1504_s6 = sadd.s32 256, %s2108_s16  ;;  %s455_s0 = sld [smem:[#allocation2 + %s454_s11]] }
  0x8e   : > { %s1520_s11 = sadd.s32 512, %s2108_s16 }
  0xb5   : > { %v622_v6 = vpop.permute.xlu0 %621  ;;  %v629_v9 = vpop.permute.xlu1 %628 }
  0xb6   : > { %v624_v7 = vsel %vm475_vm0, %v622_v6, 0.0  ;;  %v631_v11 = vsel %vm469_vm1, %v629_v9, 0.0  ;;  %v895_v6 = vmul.f32 %v2074_v0, %v834_v59  ;;  %v2096_v9 = vstv %s451_s20  ;;  %s426_s20 = sadd.s32 %s1504_s6, %s2124_s28  ;;  %s458_s6 = sadd.s32 %s1520_s11, %s2124_s28 }
  0xb7   : > { %625 = vadd.xlane.f32.xlu1 %v624_v7  ;;  %v907_v7 = vmul.f32 %v2081_v5, %v849_v4  ;;  %s427_s12 = sld [smem:[#allocation2 + %s426_s20]] }
  0xb8   : > { %s459_s9 = sld [smem:[#allocation2 + %s458_s6]] }
  0xb9   : > { %v614_v8 = vpop.permute.xlu0 %613 }
  0xba   : > { %v616_v10 = vsel %vm469_vm1, %v614_v8, 0.0  ;;  %v911_v8 = vrot.slane %v907_v7, 4 }
  0xbb   : > { %617 = vadd.xlane.f32.xlu1 %v616_v10  ;;  %v2098_v10 = vstv %s415_s25  ;;  %s1512_s25 = sadd.s32 384, %s2108_s16 }
  0xbd   : > { %v490_v13 = vpop.permute.xlu0 %489 }
  0xbe   : > { %v492_v15 = vsel %vm475_vm0, %v490_v13, 0.0  ;;  %v837_v13 = vmul.f32 %v2098_v10, %v834_v59 }
  0xbf   : > { %632 = vadd.xlane.f32.xlu1 %v631_v11  ;;  %v836_v11 = vmul.f32 %v2098_v10, %v2064_v63 }
  0xc1   : > { %v482_v16 = vpop.permute.xlu0 %481 }
  0xc2   : > { %v484_v19 = vsel %vm469_vm1, %v482_v16, 0.0  ;;  %v2118_v16 = vstv %s423_s17  ;;  %s442_s17 = sadd.s32 %s1512_s25, %s2124_s28 }
  0xc3   : > { %477 = vadd.xlane.f32.xlu1 %v476_v12  ;;  %v921_v12 = vmul.f32 %v2096_v9, %v834_v59 }
  0xc7   : > { %471 = vadd.xlane.f32.xlu1 %v470_v14  ;;  %v848_v14 = vld [vmem:[%s2547_s4] sm:$0xf0] }
  0xcb   : > { %493 = vadd.xlane.f32.xlu1 %v492_v15  ;;  %v2116_v15 = vld [vmem:[%s2547_s4] sm:$0xf] }
  0xcf   : > { %485 = vadd.xlane.f32.xlu1 %v484_v19  ;;  %v955_v19 = vmul.f32 %v2118_v16, %v2116_v15 }
  0xf0   : > { %v610_v23 = vpop.xlane.xlu1 %609 }
  0xf1   : > { %v611_v24 = vmul.f32 0.16666667, %v610_v23  ;;  %v2139_v23 = vstv %s439_s3  ;;  %s443_s3 = sld [smem:[#allocation2 + %s442_s17]] }
  0xf2   : > { %s2437_s17 = sld [smem:[#allocation6 + %s2054_s14]] }
  0xf3   : > { %v636_v27 = vrot.slane %v611_v24, 4 }
  0xf7   : > { %v605_v20 = vpop.xlane.xlu0 %604 }
  0xf8   : > { %v606_v26 = vmul.f32 0.16666667, %v605_v20 }
  0xfa   : > { %v641_v31 = vsel %vm509_vm4, %v606_v26, %v636_v27 }
  0xfb   : > { %v497_v21 = vpop.permute.xlu0 %496 }
  0xfc   : > { %v499_v22 = vsel %vm469_vm1, %v497_v21, 0.0  ;;  %v953_v21 = vld [vmem:[%s2547_s4 + $0x8] sm:$0xf] }
  0xfd   : > { %500 = vadd.xlane.f32.xlu1 %v499_v22  ;;  %v966_v22 = vld [vmem:[%s2547_s4 + $0x8] sm:$0xf0] }
  0xfe   : > { %v969_v26 = vmul.f32 %v2139_v23, %v966_v22 }
 0x10e   : > { %725 = vperm.xlu1 %1652, %v465_v54  }
 0x140   : > { %v626_v25 = vpop.xlane.xlu1 %625 }
 0x141   : > { %v627_v28 = vmul.f32 0.16666667, %v626_v25  ;;  %v956_v25 = vmul.f32 %v2118_v16, %v953_v21 }
 0x143   : > { %v639_v33 = vrot.slane %v627_v28, 4  ;;  %v973_v28 = vrot.slane %v969_v26, 4  ;;  %v2271_v26 = vld [vmem:[%s2547_s4 + $0x10] sm:$0xf0] }
 0x144   : > { %v618_v29 = vpop.xlane.xlu1 %617 }
 0x145   : > { %v619_v30 = vmul.f32 0.16666667, %v618_v29  ;;  %v865_v29 = vmul.f32 %v2056_v61, %v2064_v63 }
 0x147   : > { %v642_v32 = vsel %vm511_vm5, %v641_v31, %v619_v30  ;;  %v906_v30 = vmul.f32 %v2081_v5, %v848_v14  ;;  %v2153_v31 = vstv %s455_s0 }
 0x148   : > { %v633_v34 = vpop.xlane.xlu1 %632  ;;  %v643_v36 = vsel %vm513_vm6, %v642_v32, %v639_v33  ;;  %v983_v32 = vmul.f32 %v2153_v31, %v953_v21 }
 0x149   : > { %v634_v35 = vmul.f32 0.16666667, %v633_v34  ;;  %v910_v33 = vrot.slane %v906_v30, 4  ;;  %v2159_v34 = vstv %s427_s12  ;;  %s2389_s12 = sld [smem:[#allocation2 + %s2091_s24]] }
 0x14b   : > { %v644_v37 = vsel %vm515_vm7, %v643_v36, %v634_v35  ;;  %v1009_v35 = vmul.f32 %v2159_v34, %v2116_v15  ;;  %v2166_v36 = vstv %s443_s3 }
 0x14c   : > { %1536 = vmatmul.mubr.msk.f32.vlgmr.msra.gmra.mxu1 %vm523_vm8, %v644_v37  ;;  %v478_v38 = vpop.xlane.xlu1 %477  ;;  %v1010_v37 = vmul.f32 %v2159_v34, %v953_v21 }
 0x14d   : > { %v479_v41 = vmul.f32 0.16666667, %v478_v38  ;;  %v1022_v38 = vmul.f32 %v2166_v36, %v966_v22 }
 0x14f   : > { %v504_v42 = vrot.slane %v479_v41, 4 }
 0x150   : > { %v472_v39 = vpop.xlane.xlu1 %471 }
 0x151   : > { %v473_v43 = vmul.f32 0.16666667, %v472_v39  ;;  %v1026_v39 = vrot.slane %v1022_v38, 4 }
 0x153   : > { %v510_v47 = vsel %vm509_vm4, %v473_v43, %v504_v42  ;;  %v2179_v42 = vld [vmem:[%s2547_s4 + $0x10] sm:$0xf] }
 0x154   : > { %v494_v40 = vpop.xlane.xlu1 %493  ;;  %v1067_v43 = vmul.f32 %v2179_v42, %v2098_v10 }
 0x155   : > { %v495_v45 = vmul.f32 0.16666667, %v494_v40  ;;  %v2172_v40 = vstv %s459_s9 }
 0x156   : > { %v1036_v41 = vmul.f32 %v2172_v40, %v953_v21 }
 0x157   : > { %v507_v48 = vrot.slane %v495_v45, 4 }
 0x158   : > { %v486_v44 = vpop.xlane.xlu1 %485 }
 0x159   : > { %v487_v46 = vmul.f32 0.16666667, %v486_v44 }
 0x15b   : > { %v512_v49 = vsel %vm511_vm5, %v510_v47, %v487_v46 }
 0x15c   : > { %v514_v52 = vsel %vm513_vm6, %v512_v49, %v507_v48  ;;  %v464_v48 = vld [vmem:[%s2548_s5] sm:$0xf] }
 0x186   : > { %v501_v50 = vpop.xlane.xlu1 %500 }
 0x187   : > { %v502_v51 = vmul.f32 0.16666667, %v501_v50  ;;  %v920_v50 = vmul.f32 %v2096_v9, %v2064_v63 }
 0x189   : > { %v516_v53 = vsel %vm515_vm7, %v514_v52, %v502_v51  ;;  %v1476_v51 = vld [vmem:[%s2547_s4 + $0x18] sm:$0xf] }
 0x18a   : > { %1531 = vmatmul.mubr.msk.f32.vlgmr.msra.gmra.mxu0 %vm523_vm8, %v516_v53  ;;  %v1068_v52 = vmul.f32 %v1476_v51, %v2098_v10  ;;  %v1477_v53 = vld [vmem:[%s2547_s4 + $0x18] sm:$0xf0]  ;;  %v1116_v63 = vmul.f32 %v1476_v51, %v2074_v0  ;;  %v1140_v10 = vmul.f32 %v1476_v51, %v2096_v9 }
 0x18b   : > { %1540 = vmatprep.mubr.msk.f32.mxu0 %vm1785_vm3, %v1784_v17  ;;  %v2121_v17 = vstv %s431_s19  ;;  %s1490_s19 = sadd.s32 128, %s2027_s23 }
 0x18c   : > { %v851_v18 = vmul.f32 %v2121_v17, %v848_v14  ;;  %v852_v20 = vmul.f32 %v2121_v17, %v849_v4  ;;  %v1080_v54 = vmul.f32 %v1477_v53, %v2121_v17  ;;  %v1127_v4 = vmul.f32 %v1477_v53, %v2081_v5  ;;  %s386_s26 = sadd.s32 %s1490_s19, %s2025_s10 }
 0x18d   : > { %s2309_s0 = sld [smem:[#allocation2 + %s386_s26]] }
 0x18e   : > { %v855_v24 = vrot.slane %v851_v18, 4  ;;  %v856_v27 = vrot.slane %v852_v20, 4  ;;  %v1084_v55 = vrot.slane %v1080_v54, 4  ;;  %v1131_v7 = vrot.slane %v1127_v4, 4  ;;  %v1481_v18 = vld [vmem:[%s2547_s4 + $0x18] sm:$0xf] }
 0x18f   : > { %v1482_v20 = vld [vmem:[%s2547_s4 + $0x18] sm:$0xf0] }
 0x190   : > { %v1184_v22 = vmul.f32 %v1482_v20, %v2139_v23  ;;  %v1231_v30 = vmul.f32 %v1482_v20, %v2166_v36 }
 0x20c   : > { %v714_v57 = vpop.f32.mrf.mxu1 }
 0x20d   : > { %v715_v58 = vadd.f32 %v2042_v56, %v714_v57 }
 0x20e   : > { %v1537_v60 = vpop.f32.mrf.mxu1 }
 0x20f   : > { %719 = vrot.lane.b32.xlu0 %v715_v58, %s1787_s13  ;;  %s2589_s13 = smov 126   ;;  %v1093_v58 = vmul.f32 %v1476_v51, %v2056_v61  ;;  %v1115_v60 = vmul.f32 %v2179_v42, %v2074_v0  ;;  %v2234_v0 = vld [vmem:[%s2547_s4 + $0x10] sm:$0xf0] }
 0x210   : > { %871 = vrot.lane.b32.xlu1 %v866_v62, %s2589_s13  ;;  %v982_v62 = vmul.f32 %v2153_v31, %v2116_v15  ;;  %v1126_v21 = vmul.f32 %v2234_v0, %v2081_v5  ;;  %v1183_v5 = vmul.f32 %v2271_v26, %v2139_v23 }
 0x213   : > { %840 = vrot.lane.b32.xlu0 %v836_v11, %s2590_s29  ;;  %v1079_v11 = vmul.f32 %v2234_v0, %v2121_v17  ;;  %v1092_v17 = vmul.f32 %v2179_v42, %v2056_v61  ;;  %v1139_v61 = vmul.f32 %v2179_v42, %v2096_v9 }
 0x214   : > { %898 = vrot.lane.b32.xlu1 %v894_v1, %s2590_s29 }
 0x217   : > { %842 = vrot.lane.b32.xlu0 %v837_v13, %s2590_s29  ;;  %v1083_v13 = vrot.slane %v1079_v11, 4 }
 0x218   : > { %900 = vrot.lane.b32.xlu1 %v895_v6, %s2590_s29 }
 0x21b   : > { %857 = vrot.lane.b32.xlu0 %v855_v24, %s2590_s29  ;;  %v1130_v24 = vrot.slane %v1126_v21, 4 }
 0x21c   : > { %914 = vrot.lane.b32.xlu1 %v911_v8, %s2590_s29  ;;  %v1035_v8 = vmul.f32 %v2172_v40, %v2116_v15 }
 0x21f   : > { %859 = vrot.lane.b32.xlu0 %v856_v27, %s2590_s29  ;;  %v1187_v27 = vrot.slane %v1183_v5, 4 }
 0x220   : > { %926 = vrot.lane.b32.xlu1 %v921_v12, %s2589_s13  ;;  %v2243_v12 = vld [vmem:[%s2547_s4 + $0x10] sm:$0xf] }
 0x221   : > { %v1171_v14 = vmul.f32 %v2243_v12, %v2118_v16  ;;  %v1196_v9 = vmul.f32 %v2243_v12, %v2153_v31 }
 0x223   : > { %869 = vrot.lane.b32.xlu0 %v865_v29, %s2589_s13  ;;  %v1220_v29 = vmul.f32 %v1481_v18, %v2159_v34 }
 0x224   : > { %959 = vrot.lane.b32.xlu1 %v955_v19, %s2590_s29  ;;  %v1172_v19 = vmul.f32 %v1481_v18, %v2118_v16  ;;  %v1197_v16 = vmul.f32 %v1481_v18, %v2153_v31  ;;  %v2291_v31 = vpop.permute.xlu1 %725 }
 0x227   : > { %912 = vrot.lane.b32.xlu0 %v910_v33, %s2590_s29  ;;  %v1235_v33 = vrot.slane %v1231_v30, 4 }
 0x228   : > { %961 = vrot.lane.b32.xlu1 %v956_v25, %s2590_s29  ;;  %v1188_v25 = vrot.slane %v1184_v22, 4 }
 0x22b   : > { %924 = vrot.lane.b32.xlu0 %v920_v50, %s2589_s13 }
 0x22c   : > { %976 = vrot.lane.b32.xlu1 %v973_v28, %s2590_s29  ;;  %v1219_v28 = vmul.f32 %v2243_v12, %v2159_v34  ;;  %v1243_v34 = vmul.f32 %v2243_v12, %v2172_v40 }
 0x230   : > { %988 = vrot.lane.b32.xlu1 %v983_v32, %s2589_s13 }
 0x234   : > { %1013 = vrot.lane.b32.xlu1 %v1009_v35, %s2590_s29  ;;  %v1244_v35 = vmul.f32 %v1481_v18, %v2172_v40 }
 0x238   : > { %1015 = vrot.lane.b32.xlu1 %v1010_v37, %s2590_s29 }
 0x23c   : > { %1029 = vrot.lane.b32.xlu1 %v1026_v39, %s2590_s29 }
 0x240   : > { %1041 = vrot.lane.b32.xlu1 %v1036_v41, %s2589_s13 }
 0x244   : > { %1071 = vrot.lane.b32.xlu1 %v1067_v43, %s2590_s29 }
 0x248   : > { %1073 = vrot.lane.b32.xlu1 %v1068_v52, %s2590_s29  ;;  %v827_v52 = vstv %s2309_s0 }
 0x249   : > { %v828_v53 = vmul.f32 %v827_v52, %v1974_v2 }
 0x24a   : > { %v597_v44 = vpop.f32.mrf.mxu0 }
 0x24b   : > { %v598_v46 = vadd.f32 %v2042_v56, %v597_v44  ;;  %v2208_v56 = vld [vmem:[%s2547_s4] sm:$0xf0] }
 0x24c   : > { %v1532_v45 = vpop.f32.mrf.mxu0  ;;  %1087 = vrot.lane.b32.xlu1 %v1084_v55, %s2590_s29  ;;  %v968_v57 = vmul.f32 %v2139_v23, %v2208_v56  ;;  %v1021_v1 = vmul.f32 %v2166_v36, %v2208_v56  ;;  %v1230_v23 = vmul.f32 %v2271_v26, %v2166_v36 }
 0x24e   : > { %v972_v59 = vrot.slane %v968_v57, 4  ;;  %v1025_v6 = vrot.slane %v1021_v1, 4  ;;  %v1234_v32 = vrot.slane %v1230_v23, 4 }
 0x250   : > { %1098 = vrot.lane.b32.xlu1 %v1093_v58, %s2589_s13  ;;  %974 = vrot.lane.b32.xlu0 %v972_v59, %s2590_s29 }
 0x254   : > { %1119 = vrot.lane.b32.xlu1 %v1115_v60, %s2590_s29  ;;  %986 = vrot.lane.b32.xlu0 %v982_v62, %s2589_s13  ;;  %v830_v60 = vrot.slane %v828_v53, 4 }
 0x258   : > { %1121 = vrot.lane.b32.xlu1 %v1116_v63, %s2590_s29  ;;  %1027 = vrot.lane.b32.xlu0 %v1025_v6, %s2590_s29 }
 0x25c   : > { %1134 = vrot.lane.b32.xlu1 %v1131_v7, %s2590_s29  ;;  %1039 = vrot.lane.b32.xlu0 %v1035_v8, %s2589_s13 }
 0x260   : > { %1145 = vrot.lane.b32.xlu1 %v1140_v10, %s2589_s13  ;;  %1085 = vrot.lane.b32.xlu0 %v1083_v13, %s2590_s29 }
 0x264   : > { %1175 = vrot.lane.b32.xlu1 %v1171_v14, %s2590_s29  ;;  %1096 = vrot.lane.b32.xlu0 %v1092_v17, %s2589_s13 }
 0x268   : > { %1177 = vrot.lane.b32.xlu1 %v1172_v19, %s2590_s29  ;;  %1132 = vrot.lane.b32.xlu0 %v1130_v24, %s2590_s29 }
 0x26c   : > { %1191 = vrot.lane.b32.xlu1 %v1188_v25, %s2590_s29  ;;  %1143 = vrot.lane.b32.xlu0 %v1139_v61, %s2589_s13 }
 0x270   : > { %1202 = vrot.lane.b32.xlu1 %v1197_v16, %s2589_s13  ;;  %1189 = vrot.lane.b32.xlu0 %v1187_v27, %s2590_s29 }
 0x274   : > { %1223 = vrot.lane.b32.xlu1 %v1219_v28, %s2590_s29  ;;  %1200 = vrot.lane.b32.xlu0 %v1196_v9, %s2589_s13 }
 0x278   : > { %1225 = vrot.lane.b32.xlu1 %v1220_v29, %s2590_s29  ;;  %1236 = vrot.lane.b32.xlu0 %v1234_v32, %s2590_s29 }
 0x27c   : > { %1238 = vrot.lane.b32.xlu1 %v1235_v33, %s2590_s29  ;;  %1247 = vrot.lane.b32.xlu0 %v1243_v34, %s2589_s13  ;;  %s1492_s29 = sadd.s32 128, %s2035_s8  ;;  %s2313_s8 = sld [smem:[#allocation2 + %s2021_s21]] }
 0x27d   : > { %s394_s6 = sadd.s32 %s1492_s29, %s2038_s18  ;;  %s1494_s18 = sadd.s32 128, %s2066_s2 }
 0x27e   : > { %s2301_s9 = sld [smem:[#allocation2 + %s394_s6]]  ;;  %s402_s10 = sadd.s32 %s1494_s18, %s2070_s30 }
 0x27f   : > { %s2333_s23 = sld [smem:[#allocation2 + %s402_s10]]  ;;  %s1496_s30 = sadd.s32 128, %s2108_s16 }
 0x280   : > { %1249 = vrot.lane.b32.xlu1 %v1244_v35, %s2589_s13  ;;  %s2305_s13 = sld [smem:[#allocation2 + %s2030_s15]]  ;;  %s410_s20 = sadd.s32 %s1496_s30, %s2124_s28 }
 0x281   : > { %v720_v47 = vpop.permute.xlu0 %719  ;;  %s2337_s2 = sld [smem:[#allocation2 + %s2054_s14]]  ;;  %s1266_s14 = scalar_lea.sflag [#allocation4], %s1954_s1 }
 0x282   : > { %v722_v49 = vsel %vm515_vm7, %v598_v46, %v720_v47  ;;  %v872_v36 = vpop.permute.xlu1 %871  ;;  %v825_v55 = vstv %s2313_s8  ;;  %s2384_s25 = sld [smem:[#allocation2 + %s410_s20]] }
 0x283   : > { %1539 = vmatpush3.msk.msra.mxu0 %vm731_vm9, %v722_v49  ;;  %v826_v59 = vmul.f32 %v825_v55, %v1981_v3  ;;  %s2401_s16 = sld [smem:[#allocation6 + %s2030_s15]]  ;;  %s1446_s15 = sshll.u32 %s1954_s1, 5 }
 0x284   : > { %1541 = vmatmul.mubr.msk.f32.vlgmr.msra.gmra.mxu0 %vm515_vm7, %v464_v48  ;;  %v887_v47 = vstv %s2301_s9  ;;  %s2407_s28 = sld [smem:[#allocation6 + %s2021_s21]] }
 0x285   : > { %v841_v46 = vpop.permute.xlu0 %840  ;;  %v888_v50 = vmul.f32 %v887_v47, %v1974_v2  ;;  %v832_v62 = vadd.f32 %v830_v60, %v826_v59  ;;  %v947_v11 = vstv %s2333_s23  ;;  %v1791_v59 = vmov 4   ;;  %s2424_s21 = sld [smem:[#allocation6 + %s2091_s24]]  ;;  %s2451_s24 = scalar_lea.vmem [#allocation9], %s1446_s15 }
 0x286   : > { %v899_v37 = vpop.permute.xlu1 %898  ;;  %v885_v51 = vstv %s2305_s13  ;;  %v948_v18 = vmul.f32 %v947_v11, %v2208_v56  ;;  %v1792_v60 = vmov 5  }
 0x287   : > { %v886_v57 = vmul.f32 %v885_v51, %v1981_v3  ;;  %v890_v58 = vrot.slane %v888_v50, 4  ;;  %v944_v19 = vstv %s2337_s2 }
 0x288   : > { %v945_v22 = vmul.f32 %v944_v19, %v2116_v15  ;;  %v950_v24 = vrot.slane %v948_v18, 4 }
 0x289   : > { %v843_v48 = vpop.permute.xlu0 %842  ;;  %v892_v4 = vadd.f32 %v890_v58, %v886_v57  ;;  %v1789_v57 = vmov 2   ;;  %v1790_v58 = vmov 3  }
 0x28a   : > { %v901_v38 = vpop.permute.xlu1 %900  ;;  %v845_v49 = vsel %vm844_vm10, %v841_v46, %v843_v48  ;;  %v952_v61 = vadd.f32 %v950_v24, %v945_v22 }
 0x28b   : > { %v902_v39 = vsel %vm844_vm10, %v899_v37, %v901_v38  ;;  %v847_v2 = vadd.f32 %v845_v49, %v832_v62 }
 0x28c   : > { %v904_v8 = vadd.f32 %v902_v39, %v892_v4  ;;  %v1794_v4 = vmov 7  }
 0x28d   : > { %v858_v54 = vpop.permute.xlu0 %857 }
 0x28e   : > { %v915_v41 = vpop.permute.xlu1 %914 }
 0x291   : > { %v860_v63 = vpop.permute.xlu0 %859 }
 0x292   : > { %v927_v43 = vpop.permute.xlu1 %926  ;;  %v861_v1 = vsel %vm844_vm10, %v858_v54, %v860_v63  ;;  %v1788_v54 = vmov 1   ;;  %v1793_v63 = vmov 6  }
 0x293   : > { %v863_v6 = vadd.f32 %v861_v1, %v847_v2 }
 0x295   : > { %v870_v7 = vpop.permute.xlu0 %869 }
 0x296   : > { %v960_v44 = vpop.permute.xlu1 %959  ;;  %v874_v3 = vsel %vm873_vm11, %v870_v7, %v872_v36 }
 0x297   : > { %v2340_v10 = vadd.f32 %v874_v3, %v863_v6 }
 0x299   : > { %v913_v13 = vpop.permute.xlu0 %912 }
 0x29a   : > { %v962_v40 = vpop.permute.xlu1 %961  ;;  %v916_v14 = vsel %vm844_vm10, %v913_v13, %v915_v41 }
 0x29b   : > { %v963_v45 = vsel %vm844_vm10, %v960_v44, %v962_v40  ;;  %v918_v17 = vadd.f32 %v916_v14, %v904_v8 }
 0x29c   : > { %v965_v16 = vadd.f32 %v963_v45, %v952_v61 }
 0x29d   : > { %v925_v20 = vpop.permute.xlu0 %924 }
 0x29e   : > { %v928_v21 = vsel %vm873_vm11, %v925_v20, %v927_v43  ;;  %v977_v5 = vpop.permute.xlu1 %976 }
 0x29f   : > { %v2352_v25 = vadd.f32 %v928_v21, %v918_v17 }
 0x2a2   : > { %v2358_v62 = vpop.permute.xlu1 %988 }
 0x2a6   : > { %v1014_v1 = vpop.permute.xlu1 %1013 }
 0x2aa   : > { %v1016_v2 = vpop.permute.xlu1 %1015 }
 0x2ae   : > { %v1030_v6 = vpop.permute.xlu1 %1029 }
 0x2b2   : > { %v1042_v7 = vpop.permute.xlu1 %1041 }
 0x2b6   : > { %v2360_v3 = vpop.permute.xlu1 %1071 }
 0x2ba   : > { %v2362_v13 = vpop.permute.xlu1 %1073 }
 0x2be   : > { %v2364_v18 = vpop.permute.xlu1 %1087 }
 0x2c2   : > { %v975_v27 = vpop.permute.xlu0 %974  ;;  %v2366_v20 = vpop.permute.xlu1 %1098 }
 0x2c3   : > { %v978_v28 = vsel %vm844_vm10, %v975_v27, %v977_v5 }
 0x2c4   : > { %v2355_v9 = vadd.f32 %v978_v28, %v965_v16 }
 0x2c6   : > { %v987_v8 = vpop.permute.xlu0 %986  ;;  %v1120_v22 = vpop.permute.xlu1 %1119 }
 0x2ca   : > { %v1028_v14 = vpop.permute.xlu0 %1027  ;;  %v1122_v61 = vpop.permute.xlu1 %1121 }
 0x2ce   : > { %v1040_v17 = vpop.permute.xlu0 %1039  ;;  %v2374_v5 = vpop.permute.xlu1 %1134 }
 0x2d2   : > { %v2368_v21 = vpop.permute.xlu0 %1085  ;;  %v2380_v28 = vpop.permute.xlu1 %1145 }
 0x2d6   : > { %v2370_v24 = vpop.permute.xlu0 %1096 }
 0x2da   : > { %v2372_v16 = vpop.permute.xlu0 %1132 }
 0x2de   : > { %v2376_v27 = vpop.permute.xlu0 %1143 }
 0x344   : > { %v801_v29 = vpop.f32.mrf.mxu0 }
 0x345   : > { %v802_v23 = vadd.f32 %v801_v29, %v2291_v31  ;;  %v2382_v29 = vpop.permute.xlu0 %1189 }
 0x346   : > { %v1542_v30 = vpop.f32.mrf.mxu0 }
 0x347   : > { %v806_v32 = vsel %vm805_vm12, %v802_v23, -inf }
 0x348   : > { %v807_v33 = vrot.slane %v806_v32, 4 }
 0x349   : > { %v2391_v30 = vpop.permute.xlu0 %1200 }
 0x34a   : > { %v808_v34 = vmax.f32 %v806_v32, %v807_v33  ;;  %v1002_v32 = vstv %s2384_s25 }
 0x34c   : > { %v809_v35 = vrot.slane %v808_v34, 2 }
 0x34e   : > { %v810_v36 = vmax.f32 %v808_v34, %v809_v35  ;;  %v1003_v34 = vmul.f32 %v1002_v32, %v2208_v56  ;;  %v2397_v35 = vpop.permute.xlu0 %1236 }
 0x350   : > { %v811_v37 = vrot.slane %v810_v36, 1 }
 0x352   : > { %v812_v38 = vmax.f32 %v810_v36, %v811_v37  ;;  %v1000_v36 = vstv %s2389_s12  ;;  %v2409_v56 = vpop.permute.xlu0 %1247 }
 0x353   : > { %v1001_v37 = vmul.f32 %v1000_v36, %v2116_v15 }
 0x354   : > { %v813_v39 = vsub.f32 %v802_v23, %v812_v38  ;;  %v2386_v23 = vpop.permute.xlu1 %1175  ;;  %v1005_v38 = vrot.slane %v1003_v34, 4  ;;  %v993_v34 = vstv %s2437_s17 }
 0x356   : > { %v814_v41 = vmul.f32 1.442695, %v813_v39 }
 0x358   : > { %1661 = vpow2.f32 %v814_v41  ;;  %v2394_v33 = vpop.permute.xlu1 %1177  ;;  %v1007_v41 = vadd.f32 %v1005_v38, %v1001_v37 }
 0x35c   : > { %v2404_v39 = vpop.permute.xlu1 %1191 }
 0x360   : > { %v2415_v15 = vpop.permute.xlu1 %1202 }
 0x365   : > { %v1662_v43 = vpop.eup %1661 }
 0x366   : > { %v816_v44 = vsel %vm805_vm12, %v1662_v43, 0.0 }
 0x367   : > { %v817_v40 = vrot.slane %v816_v44, 4 }
 0x369   : > { %v818_v45 = vadd.f32 %v817_v40, %v816_v44  ;;  %v1110_v44 = vmul.f32 %v2234_v0, %v887_v47 }
 0x36b   : > { %v819_v46 = vrot.slane %v818_v45, 2 }
 0x36d   : > { %v820_v48 = vadd.f32 %v819_v46, %v818_v45  ;;  %v931_v45 = vstv %s2401_s16 }
 0x36e   : > { %v932_v47 = vadd.f32 %v931_v45, %v2352_v25 }
 0x36f   : > { %v821_v49 = vrot.slane %v820_v48, 1 }
 0x371   : > { %v822_v50 = vadd.f32 %v821_v49, %v820_v48  ;;  %v1061_v48 = vmul.f32 %v2234_v0, %v827_v52  ;;  %v1031_v49 = vsel %vm844_vm10, %v1028_v14, %v1030_v6  ;;  %v1214_v6 = vmul.f32 %v2271_v26, %v1002_v32 }
 0x372   : > { %v1136_v32 = vsel %vm844_vm10, %v2372_v16, %v2374_v5  ;;  %v1147_v16 = vsel %vm873_vm11, %v2376_v27, %v2380_v28  ;;  %v1179_v27 = vsel %vm844_vm10, %v2386_v23, %v2394_v33 }
 0x373   : > { %1663 = vrcp.f32 %v822_v50  ;;  %v877_v50 = vstv %s2407_s28  ;;  %v1063_v0 = vrot.slane %v1061_v48, 4 }
 0x380   : > { %v1664_v31 = vpop.eup %1663 }
 0x381   : > { %v824_v53 = vmul.f32 %v1664_v31, %v1662_v43  ;;  %v1017_v43 = vsel %vm844_vm10, %v1014_v1, %v1016_v2  ;;  %v1109_v31 = vmul.f32 %v2179_v42, %v885_v51  ;;  %v1043_v51 = vsel %vm873_vm11, %v1040_v17, %v1042_v7 }
 0x382   : > { %v1019_v46 = vadd.f32 %v1017_v43, %v1007_v41  ;;  %v1075_v7 = vsel %vm844_vm10, %v2360_v3, %v2362_v13  ;;  %v1213_v3 = vmul.f32 %v2243_v12, %v1000_v36  ;;  %v1216_v13 = vrot.slane %v1214_v6, 4 }
 0x383   : > { %881 = vperm.xlu0 %1653, %v824_v53   ;;  %v1089_v41 = vsel %vm844_vm10, %v2368_v21, %v2364_v18 }
 0x384   : > { %v1033_v52 = vadd.f32 %v1031_v49, %v1019_v46  ;;  %v1218_v36 = vadd.f32 %v1216_v13, %v1213_v3 }
 0x386   : > { %v1045_v2 = vadd.f32 %v1043_v51, %v1033_v52 }
 0x387   : > { %1654 = vset.pattern.permute.xlu0 %v1788_v54  ;;  %v1059_v54 = vmul.f32 %v2179_v42, %v825_v55  ;;  %v990_v42 = vsel %vm873_vm11, %v987_v8, %v2358_v62  ;;  %v1123_v55 = vsel %vm844_vm10, %v1120_v22, %v1122_v61  ;;  %v1046_v62 = vstv %s2424_s21 }
 0x388   : > { %934 = vperm.xlu0 %1654, %v824_v53   ;;  %v992_v8 = vadd.f32 %v990_v42, %v2355_v9  ;;  %v1165_v22 = vmul.f32 %v2271_v26, %v947_v11  ;;  %v1047_v38 = vadd.f32 %v1046_v62, %v1045_v2  ;;  %v1163_v9 = vmul.f32 %v2243_v12, %v944_v19 }
 0x389   : > { %v1100_v12 = vsel %vm873_vm11, %v2370_v24, %v2366_v20 }
 0x38a   : > { %v1167_v26 = vrot.slane %v1165_v22, 4 }
 0x38c   : > { %1655 = vset.pattern.permute.xlu0 %v1789_v57  ;;  %v1169_v18 = vadd.f32 %v1167_v26, %v1163_v9 }
 0x38d   : > { %996 = vperm.xlu0 %1655, %v824_v53  }
 0x391   : > { %1656 = vset.pattern.permute.xlu0 %v1790_v58  ;;  %v1224_v58 = vpop.permute.xlu1 %1223 }
 0x392   : > { %1049 = vperm.xlu0 %1656, %v824_v53  }
 0x395   : > { %v1226_v61 = vpop.permute.xlu1 %1225 }
 0x396   : > { %1657 = vset.pattern.permute.xlu0 %v1791_v59  ;;  %v878_v59 = vadd.f32 %v877_v50, %v2340_v10  ;;  %v1227_v19 = vsel %vm844_vm10, %v1224_v58, %v1226_v61 }
 0x397   : > { %1105 = vperm.xlu0 %1657, %v824_v53  }
 0x399   : > { %v1239_v46 = vpop.permute.xlu1 %1238 }
 0x39b   : > { %1658 = vset.pattern.permute.xlu0 %v1792_v60 }
 0x39c   : > { %1152 = vperm.xlu0 %1658, %v824_v53  }
 0x39d   : > { %v1250_v20 = vpop.permute.xlu1 %1249 }
 0x39e   : > { %v1251_v33 = vsel %vm873_vm11, %v2409_v56, %v1250_v20 }
 0x3a0   : > { %1659 = vset.pattern.permute.xlu0 %v1793_v63 }
 0x3a1   : > { %1209 = vperm.xlu0 %1659, %v824_v53  }
 0x3a5   : > { %1660 = vset.pattern.permute.xlu0 %v1794_v4  ;;  %v1065_v4 = vadd.f32 %v1063_v0, %v1059_v54  ;;  %v1240_v54 = vsel %vm844_vm10, %v2397_v35, %v1239_v46  ;;  %v1193_v0 = vsel %vm844_vm10, %v2382_v29, %v2404_v39 }
 0x3a6   : > { %1256 = vperm.xlu0 %1660, %v824_v53   ;;  %v1112_v53 = vrot.slane %v1110_v44, 4  ;;  %v994_v44 = vadd.f32 %v993_v34, %v992_v8 }
 0x3a7   : > { %v1077_v37 = vadd.f32 %v1075_v7, %v1065_v4 }
 0x3a8   : > { %v1114_v63 = vadd.f32 %v1112_v53, %v1109_v31 }
 0x3a9   : > { %v1091_v5 = vadd.f32 %v1089_v41, %v1077_v37 }
 0x3aa   : > { %v1125_v17 = vadd.f32 %v1123_v55, %v1114_v63 }
 0x3ab   : > { %v1102_v28 = vadd.f32 %v1100_v12, %v1091_v5 }
 0x3ac   : > { %v1138_v11 = vadd.f32 %v1136_v32, %v1125_v17 }
 0x3ae   : > { %v1149_v21 = vadd.f32 %v1147_v16, %v1138_v11 }
 0x3b0   : > { %v1150_v24 = vadd.f32 %v1149_v21, %v931_v45  ;;  %v1204_v45 = vsel %vm873_vm11, %v2391_v30, %v2415_v15 }
 0x3fe   : > { %v882_v40 = vpop.permute.xlu0 %881 }
 0x3ff   : > { %v884_v25 = vmul.f32 %v882_v40, %v878_v59  ;;  %v1103_v59 = vadd.f32 %v1102_v28, %v877_v50 }
 0x403   : > { %v935_v57 = vpop.permute.xlu0 %934 }
 0x404   : > { %v937_v60 = vmul.f32 %v935_v57, %v932_v47  ;;  %v1229_v47 = vadd.f32 %v1227_v19, %v1218_v36  ;;  %v1181_v57 = vadd.f32 %v1179_v27, %v1169_v18 }
 0x406   : > { %v939_v1 = vrot.slane %v937_v60, 4  ;;  %v1242_v58 = vadd.f32 %v1240_v54, %v1229_v47  ;;  %v1195_v60 = vadd.f32 %v1193_v0, %v1181_v57 }
 0x408   : > { %v941_v10 = vsel %vm731_vm9, %v884_v25, %v939_v1  ;;  %v997_v14 = vpop.permute.xlu0 %996  ;;  %v1253_v63 = vadd.f32 %v1251_v33, %v1242_v58  ;;  %v1206_v25 = vadd.f32 %v1204_v45, %v1195_v60 }
 0x409   : > { %942 = vst [vmem:[%s2451_s24] sm:$0xff] %v941_v10  ;;  %v999_v48 = vmul.f32 %v997_v14, %v994_v44 }
 0x40a   : > { %v1254_v50 = vadd.f32 %v1253_v63, %v1046_v62  ;;  %v1207_v42 = vadd.f32 %v1206_v25, %v993_v34 }
 0x40d   : > { %v1050_v43 = vpop.permute.xlu0 %1049 }
 0x40e   : > { %v1052_v40 = vmul.f32 %v1050_v43, %v1047_v38 }
 0x410   : > { %v1054_v49 = vrot.slane %v1052_v40, 4 }
 0x412   : > { %v1056_v31 = vsel %vm731_vm9, %v999_v48, %v1054_v49  ;;  %v1106_v53 = vpop.permute.xlu0 %1105 }
 0x413   : > { %1057 = vst [vmem:[%s2451_s24 + $0x8] sm:$0xff] %v1056_v31  ;;  %v1108_v35 = vmul.f32 %v1106_v53, %v1103_v59 }
 0x417   : > { %v1153_v52 = vpop.permute.xlu0 %1152 }
 0x418   : > { %v1155_v23 = vmul.f32 %v1153_v52, %v1150_v24 }
 0x41a   : > { %v1157_v51 = vrot.slane %v1155_v23, 4 }
 0x41c   : > { %v1159_v29 = vsel %vm731_vm9, %v1108_v35, %v1157_v51  ;;  %v1210_v39 = vpop.permute.xlu0 %1209 }
 0x41d   : > { %1478 = vst [vmem:[%s2451_s24 + $0x10] sm:$0xff] %v1159_v29  ;;  %v1212_v56 = vmul.f32 %v1210_v39, %v1207_v42 }
 0x421   : > { %v1257_v1 = vpop.permute.xlu0 %1256 }
 0x422   : > { %v1259_v55 = vmul.f32 %v1257_v1, %v1254_v50 }
 0x424   : > { %v1261_v4 = vrot.slane %v1259_v55, 4 }
 0x426   : > { %v1263_v2 = vsel %vm731_vm9, %v1212_v56, %v1261_v4 }
 0x427   : > { %1483 = vst [vmem:[%s2451_s24 + $0x18] sm:$0xff] %v1263_v2 }
 0x428   : > { %s1521_s3 = sshll.u32 %s1769_s27, 8  ;;  %s1292_s11 = sshll.u32 %s2451_s24, 4  ;;  %s1293_s11 = int_to_ptr.vmem [resolvable:$true] %s1292_s11 }
 0x429   : > { %s1281_s9 = scalar_lea.hbm %s2550_s7, %s1521_s3  ;;  %s1795_s13 = smov 256  }
 0x42a   : > { %p2591_p4 = scmp.ne.s32.totalorder %s2583_s22, 0  ;;  %s1796_s1 = smov 512  }
 0x42b   : > { %s1797_s19 = smov 2   ;;  %s1798_s26 = smov 128  }
 0x42c   : > { %1553 = sst [smem:[#allocation11]] (%p2591_p4), %s1795_s13  ;;  %s1799_s27 = smov 8  }
 0x42d   : > { %1554 = sst [smem:[#allocation11 + $0x1]] (%p2591_p4), %s1796_s1  ;;  %s1800_s0 = smov 131072  }
 0x42e   : > { %1555 = sst [smem:[#allocation11 + $0x2]] (%p2591_p4), %s1797_s19  ;;  %s1801_s8 = smov 0  }
 0x42f   : > { %1556 = sst [smem:[#allocation11 + $0x3]] (%p2591_p4), %s1798_s26 }
 0x430   : > { %1557 = sst [smem:[#allocation11 + $0x4]] (%p2591_p4), %s1798_s26 }
 0x431   : > { %1558 = sst [smem:[#allocation11 + $0x5]] (%p2591_p4), %s1799_s27 }
 0x432   : > { %1559 = dma.general (%p2591_p4), %s1293_s11, 512, %s1281_s9, %s1266_s14, %s1800_s0, [#allocation11], %s1801_s8, 0  }
 0x433 PF: > { %s2592_s18 = sld [smem:[#allocation16_spill]] }
 0x434   : > { %s2593_s10 = sld [smem:[#allocation21_spill]] }
 0x435   : > { %s2594_s23 = sld [smem:[#allocation20_spill]] }
 0x439   : > { %s1320_s2 = sand.u32 1, %s2592_s18  }
 0x43a   : > { %p2595_p6 = scmp.ne.s32.totalorder %s2593_s10, 0  ;;  %s1321_s30 = scalar_lea.sflag [#allocation4], %s1320_s2 }
 0x43b   : > { %p2596_p8 = scmp.ge.s32.totalorder %s2594_s23, 2 }
 0x43d   : > { %p1573_p9 = pnand %p2596_p8, %p2595_p6 }
 0x43f   : > { %p1574_p3 = pneg %p1573_p9 }
 0x441   : > { %1752 = dma.done.wait (%p1574_p3), %s1321_s30, 512  }
 0x442   : > { %1754 = vsyncadd (%p1574_p3), %s1321_s30, 4294966784  ;;  %s25_s29 = sadd.s32 1, %s2594_s23   ;;  %s2597_s24 = sld [smem:[#allocation17_spill]] }
 0x443   : > { %p22_p5 = scmp.ge.s32.totalorder %s25_s29, 4   ;;  %s2598_s25 = sld [smem:[#allocation18_spill]] }
 0x444   : > { %s2599_s26 = sld [smem:[#allocation23_spill]] }
 0x445   : > { %s2600_s27 = sld [smem:[#allocation19_spill]]  ;;  %24 = sbr.rel (!%p22_p5) target bundleno = 14 (0xe), region = 115 }
 0x446   : > { %s2601_s28 = sld [smem:[#allocation22_spill]] }
 0x44a   :  { %1326 = vsyncpa [#allocation3], 1 }
 0x44b   :  { %1328 = vsyncpa [#allocation3 + $0x1], 1 }
 0x44c   :  { %1329 = vsyncpa [#allocation4], 1 }
 0x44d   :  { %1331 = vsyncpa [#allocation4 + $0x1], 1 }
 0x44e   :  { %1332 = vsyncpa [#allocation5], 1 }
 0x44f   :  { %1334 = vsyncpa [#allocation5 + $0x1], 1 }
 0x450   :  { %1335 = vsyncpa [#allocation7], 1 }

</bundles_post_ra>
